<compile_context>
chip_gen: v7x
topology: tpu7x:2x2x1
jax: 0.10.0
libtpu: 0.0.40
codegen_flags: <defaults>
</compile_context>

<pallas_src>
import math

import jax
import jax.numpy as jnp
from jax.experimental import pallas as pl
from jax.experimental.pallas import tpu as pltpu


# ----------------------------------------------------------------------------
# Fused Pallas kernel (one time-chunk per grid step)
# ----------------------------------------------------------------------------
def _make_decoder_kernel(C, Bp, H, alpha_lane):
    """Build the fused decoder kernel (closure over static sizes)."""
    f32 = jnp.float32
    H3 = 3 * H

    def cell(gi, gh, bhn, h_prev):
        # PyTorch GRU semantics, gate order (r, z, n).  The r/z slices of the
        # recurrent bias were folded into gi at prep time; bh_n must stay
        # inside r * (.) and is passed pre-broadcast (hoisted out of the loop).
        r = jax.nn.sigmoid(gi[:, :H] + gh[:, :H])
        z = jax.nn.sigmoid(gi[:, H:2 * H] + gh[:, H:2 * H])
        n = jnp.tanh(gi[:, 2 * H:] + r * (gh[:, 2 * H:] + bhn))
        return (1.0 - z) * n + z * h_prev

    def kernel(x_ref, c0_ref,
               wi1_ref, bi1f_ref, w12_ref, wh2_ref,
               bi2f_ref, bh1n_ref, bh2n_ref,
               whead_ref, bhead_ref, wconv_ref, shift_ref,
               out_ref,
               gi_ref, c_sc, h1_sc, h2_sc):
        # --- cross-chunk hidden-state carry init --------------------------
        @pl.when(pl.program_id(0) == 0)
        def _():
            h1_sc[...] = jnp.zeros((Bp, H), f32)
            h2_sc[...] = jnp.zeros((Bp, H), f32)

        # --- (1) batched, time-independent layer-1 input projection -------
        # One (C*Bp, E) @ (E, 3H) matmul per chunk instead of C tiny ones.
        gi_ref[...] = (jnp.dot(x_ref[...], wi1_ref[...],
                               preferred_element_type=f32) + bi1f_ref[...])

        # Loop-invariant loads / broadcasts hoisted out of the recurrence.
        w12 = w12_ref[...]                                   # [Wh1 | Wi2]
        wh2 = wh2_ref[...]
        bi2f = jnp.broadcast_to(bi2f_ref[...], (Bp, H3))
        bh1n = jnp.broadcast_to(bh1n_ref[...], (Bp, H))
        bh2n = jnp.broadcast_to(bh2n_ref[...], (Bp, H))

        # --- (2) skewed (wavefront) two-layer GRU recurrence --------------
        # Prologue: layer-1 for local step 0 from the carried hidden state.
        h1p = h1_sc[...]
        h2p = h2_sc[...]
        g_pro = jnp.dot(h1p, w12, preferred_element_type=f32)
        h1_first = cell(gi_ref[pl.ds(0, Bp), :], g_pro[:, :H3], bh1n, h1p)

        # Steady state: iteration j computes layer-1 for step j+1 and
        # layer-2 for step j.  Both cells hang off ONE fused matmul on h1
        # plus an independent gh2 dot, so their MXU/EUP work can overlap.
        def step(j, carry):
            h1_cur, h2_prev = carry                     # h1[j], h2[j-1]
            row = pl.multiple_of(j * Bp, 8)
            row_next = pl.multiple_of((j + 1) * Bp, 8)
            g12 = jnp.dot(h1_cur, w12, preferred_element_type=f32)  # [gh1|gi2]
            gh2 = jnp.dot(h2_prev, wh2, preferred_element_type=f32)
            h1_next = cell(gi_ref[pl.ds(row_next, Bp), :],
                           g12[:, :H3], bh1n, h1_cur)                # layer 1, j+1
            h2_cur = cell(g12[:, H3:] + bi2f, gh2, bh2n, h2_prev)    # layer 2, j
            # GroupedGRU(add_outputs=True): sum of layer outputs.
            c_sc[pl.ds(row, Bp), :] = h1_cur + h2_cur
            return (h1_next, h2_cur)

        h1_last, h2_prev = jax.lax.fori_loop(
            0, C - 1, step, (h1_first, h2p),
            unroll=min(max(C - 1, 1), 8))               # bounded unroll

        # Epilogue: layer-2 for the chunk's last step, then persist the carry.
        g_epi = jnp.dot(h1_last, w12, preferred_element_type=f32)
        gh2 = jnp.dot(h2_prev, wh2, preferred_element_type=f32)
        h2_last = cell(g_epi[:, H3:] + bi2f, gh2, bh2n, h2_prev)
        last_row = pl.multiple_of((C - 1) * Bp, 8)
        c_sc[pl.ds(last_row, Bp), :] = h1_last + h2_last
        h1_sc[...] = h1_last
        h2_sc[...] = h2_last

        # --- (3) head over all C*Bp rows, one lane-dense store -------------
        #   lanes [0, alpha_lane) : tanh(c@Wo+bo) + relu(conv0*bn)   (df out)
        #   lane   alpha_lane     : sigmoid(c@Wa+ba) = 0.5*tanh(.)+0.5 (alpha)
        #   remaining lanes       : 0 (discarded in the wrapper)
        g = (jnp.dot(c_sc[...], whead_ref[...], preferred_element_type=f32)
             + bhead_ref[...])
        z = jnp.maximum(
            jnp.dot(c0_ref[...], wconv_ref[...], preferred_element_type=f32)
            + shift_ref[...], 0.0)                      # BN(eval, scale folded)+ReLU
        t = jnp.tanh(g)                                 # single EUP pass
        lane = jax.lax.broadcasted_iota(jnp.int32, g.shape, 1)
        out_ref[...] = jnp.where(lane == alpha_lane, 0.5 * t + 0.5, t + z)

    return kernel


def df_decoder_pallas(x2d, c0flat, kp, T, Bp, H, out_w, alpha_lane, chunk):
    """Time-chunked pallas_call; weights resident once, x/c0/out per-chunk DMA."""
    assert T % chunk == 0, "T must be a multiple of the time-chunk size"
    n_chunks = T // chunk
    rows_c = chunk * Bp
    n_rows = T * Bp
    kernel = _make_decoder_kernel(chunk, Bp, H, alpha_lane)

    def full(arr):     # whole-array resident block (fetched once; index const)
        return pl.BlockSpec(arr.shape, lambda c: (0,) * arr.ndim)

    def tiled(arr):    # per-time-chunk block (double-buffered by the pipeline)
        return pl.BlockSpec((rows_c, arr.shape[1]), lambda c: (c, 0))

    grid_spec = pltpu.PrefetchScalarGridSpec(
        num_scalar_prefetch=0,
        grid=(n_chunks,),
        in_specs=[
            tiled(x2d), tiled(c0flat),
            full(kp["wi1"]), full(kp["bi1f"]), full(kp["w12"]), full(kp["wh2"]),
            full(kp["bi2f"]), full(kp["bh1n"]), full(kp["bh2n"]),
            full(kp["w_head"]), full(kp["b_head"]),
            full(kp["w_conv"]), full(kp["shift"]),
        ],
        out_specs=pl.BlockSpec((rows_c, out_w), lambda c: (c, 0)),
        scratch_shapes=[
            pltpu.VMEM((rows_c, 3 * H), jnp.float32),   # per-chunk gi (layer 1)
            pltpu.VMEM((rows_c, H), jnp.float32),       # per-chunk summed outputs
            pltpu.VMEM((Bp, H), jnp.float32),           # h1 carry across chunks
            pltpu.VMEM((Bp, H), jnp.float32),           # h2 carry across chunks
        ],
    )
    return pl.pallas_call(
        kernel,
        out_shape=jax.ShapeDtypeStruct((n_rows, out_w), jnp.float32),
        grid_spec=grid_spec,
        compiler_params=pltpu.CompilerParams(
            # recurrence axis is sequential; size `chunk` so
            # 2*(x+c0+out blocks) + gi/c scratch fits the target generation
            # (halve a v6e-sized chunk for v7x's 64 MiB VMEM).
            dimension_semantics=("arbitrary",),
            vmem_limit_bytes=32 * 1024 * 1024,
        ),
    )(x2d, c0flat,
      kp["wi1"], kp["bi1f"], kp["w12"], kp["wh2"],
      kp["bi2f"], kp["bh1n"], kp["bh2n"],
      kp["w_head"], kp["b_head"], kp["w_conv"], kp["shift"])


# ----------------------------------------------------------------------------
# Parameters (deterministic synthetic init)
# ----------------------------------------------------------------------------
def make_params(key, emb_dim, hid, num_layers, conv_ch, df_out_ch, df_bins):
    ks = iter(jax.random.split(key, 32))

    def init(shape, scale=0.1):
        return scale * jax.random.normal(next(ks), shape, dtype=jnp.float32)

    p = {}
    # Stacked GRU layers (GroupedGRU, groups=1). Gate order (r, z, n).
    p["gru"] = []
    d_in = emb_dim
    for _ in range(num_layers):
        p["gru"].append(dict(
            wi=init((d_in, 3 * hid)), wh=init((hid, 3 * hid)),
            bi=init((1, 3 * hid)), bh=init((1, 3 * hid))))
        d_in = hid

    # df_out: Linear(hid -> df_bins*df_out_ch) ; df_fc_a: Linear(hid -> 1)
    out_dim = df_bins * df_out_ch
    p["wo"] = init((hid, out_dim))
    p["bo"] = init((1, out_dim))
    p["wa"] = init((hid, 1))
    p["ba"] = init((1, 1))

    # df_convp: grouped 1x1 conv (groups = gcd(conv_ch, df_out_ch), bias=False)
    groups = math.gcd(conv_ch, df_out_ch)
    cin_g, cout_g = conv_ch // groups, df_out_ch // groups
    w_conv = init((df_out_ch, cin_g))                   # torch weight[:, :, 0, 0]
    wc = jnp.zeros((conv_ch, df_out_ch), jnp.float32)   # dense (Cin, Cout)
    for g in range(groups):
        blk = w_conv[g * cout_g:(g + 1) * cout_g, :]    # (cout_g, cin_g)
        wc = wc.at[g * cin_g:(g + 1) * cin_g,
                   g * cout_g:(g + 1) * cout_g].set(blk.T)
    # Block-diagonal over frequency bins: (F*Cin, F*Cout)
    wcb = jnp.zeros((df_bins * conv_ch, df_bins * df_out_ch), jnp.float32)
    for f in range(df_bins):
        wcb = wcb.at[f * conv_ch:(f + 1) * conv_ch,
                     f * df_out_ch:(f + 1) * df_out_ch].set(wc)
    p["wcb"] = wcb

    # BatchNorm2d(df_out_ch) in eval mode -> per-channel scale/shift.
    gamma = 1.0 + init((df_out_ch,), 0.05)
    beta = init((df_out_ch,), 0.05)
    rmean = init((df_out_ch,), 0.05)
    rvar = 1.0 + jnp.abs(init((df_out_ch,), 0.05))
    eps = 1e-5
    scale_c = gamma / jnp.sqrt(rvar + eps)
    shift_c = beta - rmean * scale_c
    p["bn_scale"] = jnp.tile(scale_c, df_bins)[None, :]   # (1, F*Cout)
    p["bn_shift"] = jnp.tile(shift_c, df_bins)[None, :]
    return p


def prep_kernel_params(p, hid, df_bins, df_out_ch, conv_ch, out_w):
    """Fold/pack the math parameters into kernel-friendly, lane-dense form."""
    H = hid
    fc = df_bins * df_out_ch
    g1, g2 = p["gru"]

    # r/z parts of the recurrent bias fold into the input-projection bias;
    # only the n-gate recurrent bias stays on the h path (inside r*(...)).
    bi1f = g1["bi"].at[:, :2 * H].add(g1["bh"][:, :2 * H])     # (1, 3H)
    bi2f = g2["bi"].at[:, :2 * H].add(g2["bh"][:, :2 * H])     # (1, 3H)
    bh1n = g1["bh"][:, 2 * H:]                                 # (1, H)
    bh2n = g2["bh"][:, 2 * H:]                                 # (1, H)
    # Fused per-step weight for everything consuming h1: [Wh1 | Wi2].
    w12 = jnp.concatenate([g1["wh"], g2["wi"]], axis=1)        # (H, 6H)

    kp = dict(wi1=g1["wi"], bi1f=bi1f, w12=w12, wh2=g2["wh"],
              bi2f=bi2f, bh1n=bh1n, bh2n=bh2n)

    # Packed head weight: [Wo | 0.5*Wa | 0-pad] -> (H, out_w); same for bias.
    # 0.5 folded in so sigmoid(x) = 0.5*tanh(x/2)+0.5 needs only one tanh pass.
    w_head = jnp.zeros((H, out_w), jnp.float32)
    w_head = w_head.at[:, :fc].set(p["wo"]).at[:, fc:fc + 1].set(0.5 * p["wa"])
    b_head = jnp.zeros((1, out_w), jnp.float32)
    b_head = b_head.at[:, :fc].set(p["bo"]).at[:, fc:fc + 1].set(0.5 * p["ba"])
    kp["w_head"], kp["b_head"] = w_head, b_head

    # Conv weight with the BN scale folded into its columns, padded to out_w.
    wcb_scaled = p["wcb"] * p["bn_scale"]                 # (F*Cin, F*Cout)
    w_conv = jnp.zeros((df_bins * conv_ch, out_w), jnp.float32)
    w_conv = w_conv.at[:, :fc].set(wcb_scaled)
    shift = jnp.zeros((1, out_w), jnp.float32).at[:, :fc].set(p["bn_shift"])
    kp["w_conv"], kp["shift"] = w_conv, shift
    return kp


# ----------------------------------------------------------------------------
# Full forward (glue = layout only) and pure-JAX reference
# ----------------------------------------------------------------------------
def df_decoder_forward(emb_btd, c0_nchw, p, df_bins, df_out_ch, chunk=4):
    """emb: (B,T,E), c0: (B,Cin,T,F) -> (c (B,T,F,Cout), alpha (B,T,1))."""
    B, T, E = emb_btd.shape
    Cin = c0_nchw.shape[1]
    H = p["gru"][0]["wh"].shape[0]
    Bp = ((B + 7) // 8) * 8                               # pad batch to sublanes
    fc = df_bins * df_out_ch
    out_w = ((fc + 1 + 127) // 128) * 128                 # lane-dense output width
    alpha_lane = fc

    # glue: layout changes only
    x = jnp.transpose(emb_btd, (1, 0, 2)).astype(jnp.float32)       # (T, B, E)
    x = jnp.pad(x, ((0, 0), (0, Bp - B), (0, 0))).reshape(T * Bp, E)
    c0 = jnp.transpose(c0_nchw, (2, 0, 3, 1)).astype(jnp.float32)   # (T, B, F, Cin)
    c0 = jnp.pad(c0, ((0, 0), (0, Bp - B), (0, 0), (0, 0)))
    c0 = c0.reshape(T * Bp, df_bins * Cin)

    kp = prep_kernel_params(p, H, df_bins, df_out_ch, Cin, out_w)
    out = df_decoder_pallas(x, c0, kp, T, Bp, H, out_w, alpha_lane, chunk)

    out = out.reshape(T, Bp, out_w)[:, :B, :]             # drop batch padding
    y = out[..., :fc]                                     # (T, B, F*Cout)
    alpha = out[..., fc:fc + 1]                           # (T, B, 1)
    c_out = jnp.transpose(y, (1, 0, 2)).reshape(B, T, df_bins, df_out_ch)
    alpha = jnp.transpose(alpha, (1, 0, 2))               # (B, T, 1)
    return c_out, alpha


def _gru_layer_ref(x, wi, wh, bi, bh):
    T, B, _ = x.shape
    H = wh.shape[0]

    def step(h, xt):
        gi = xt @ wi + bi
        gh = h @ wh + bh
        r = jax.nn.sigmoid(gi[:, :H] + gh[:, :H])
        z = jax.nn.sigmoid(gi[:, H:2 * H] + gh[:, H:2 * H])
        n = jnp.tanh(gi[:, 2 * H:] + r * gh[:, 2 * H:])
        h_new = (1.0 - z) * n + z * h
        return h_new, h_new

    _, ys = jax.lax.scan(step, jnp.zeros((B, H), jnp.float32), x)
    return ys


def df_decoder_reference(emb_btd, c0_nchw, p, df_bins, df_out_ch):
    B, T, _ = emb_btd.shape
    Cin = c0_nchw.shape[1]
    x = jnp.transpose(emb_btd, (1, 0, 2)).astype(jnp.float32)
    c0_flat = jnp.transpose(c0_nchw, (2, 0, 3, 1)).reshape(T, B, df_bins * Cin)

    outs, inp = [], x
    for lp in p["gru"]:
        inp = _gru_layer_ref(inp, lp["wi"], lp["wh"], lp["bi"], lp["bh"])
        outs.append(inp)
    c = outs[0] + outs[1]

    alpha = jax.nn.sigmoid(jnp.einsum("tbh,ho->tbo", c, p["wa"]) + p["ba"])
    o = jnp.tanh(jnp.einsum("tbh,ho->tbo", c, p["wo"]) + p["bo"])
    z = jnp.maximum(
        jnp.einsum("tbi,io->tbo", c0_flat, p["wcb"]) * p["bn_scale"]
        + p["bn_shift"], 0.0)
    y = o + z
    c_out = jnp.transpose(y, (1, 0, 2)).reshape(B, T, df_bins, df_out_ch)
    return c_out, jnp.transpose(alpha, (1, 0, 2))


# ----------------------------------------------------------------------------
if __name__ == "__main__":
    # Small synthetic config (see header comment).
    B, T = 2, 8
    EMB_DIM = 32          # emb_hidden_dim
    DF_HID = 32           # df_hidden_dim
    NUM_LAYERS = 2        # df_num_layers
    CONV_CH = 4           # conv_ch (layer_width)
    DF_ORDER = 3
    DF_OUT_CH = DF_ORDER * 2
    DF_BINS = 8           # nb_df
    CHUNK = 4             # time-chunk: 2 grid steps -> exercises the carry path

    key = jax.random.PRNGKey(0)
    k_emb, k_c0, k_par = jax.random.split(key, 3)

    emb = jax.random.normal(k_emb, (B, T, EMB_DIM), dtype=jnp.float32)
    c0 = jax.random.normal(k_c0, (B, CONV_CH, T, DF_BINS), dtype=jnp.float32)

    params = make_params(k_par, EMB_DIM, DF_HID, NUM_LAYERS,
                         CONV_CH, DF_OUT_CH, DF_BINS)

    c_out, alpha = df_decoder_forward(emb, c0, params, DF_BINS, DF_OUT_CH,
                                      chunk=CHUNK)
    c_out = jax.block_until_ready(c_out)
    alpha = jax.block_until_ready(alpha)

    # Correctness check against a pure-JAX reference of the same math.
    # (2e-3 tolerance explicitly accepted: f32 MXU matmuls may use reduced-
    #  precision passes by default; the reference path may round differently.)
    c_ref, a_ref = df_decoder_reference(emb, c0, params, DF_BINS, DF_OUT_CH)
    assert c_out.shape == (B, T, DF_BINS, DF_OUT_CH)
    assert alpha.shape == (B, T, 1)
    assert float(jnp.max(jnp.abs(c_out - c_ref))) < 2e-3
    assert float(jnp.max(jnp.abs(alpha - a_ref))) < 2e-3

    print("KERNEL_OK")
</pallas_src>

<mosaic_0001>
module attributes {stable_mosaic.version = 11 : i64} {
  func.func @kernel(%arg0: i32, %arg1: memref<32x32xf32, #tpu.memory_space<vmem>>, %arg2: memref<32x32xf32, #tpu.memory_space<vmem>>, %arg3: memref<32x96xf32, #tpu.memory_space<vmem>>, %arg4: memref<1x96xf32, #tpu.memory_space<vmem>>, %arg5: memref<32x192xf32, #tpu.memory_space<vmem>>, %arg6: memref<32x96xf32, #tpu.memory_space<vmem>>, %arg7: memref<1x96xf32, #tpu.memory_space<vmem>>, %arg8: memref<1x32xf32, #tpu.memory_space<vmem>>, %arg9: memref<1x32xf32, #tpu.memory_space<vmem>>, %arg10: memref<32x128xf32, #tpu.memory_space<vmem>>, %arg11: memref<1x128xf32, #tpu.memory_space<vmem>>, %arg12: memref<32x128xf32, #tpu.memory_space<vmem>>, %arg13: memref<1x128xf32, #tpu.memory_space<vmem>>, %arg14: memref<32x128xf32, #tpu.memory_space<vmem>>, %arg15: memref<32x96xf32, #tpu.memory_space<vmem>>, %arg16: memref<32x32xf32, #tpu.memory_space<vmem>>, %arg17: memref<8x32xf32, #tpu.memory_space<vmem>>, %arg18: memref<8x32xf32, #tpu.memory_space<vmem>>) attributes {dimension_semantics = [#tpu.dimension_semantics<arbitrary>], iteration_bounds = array<i64: 2>, scalar_prefetch = 0 : i64, scratch_operands = 4 : i64, tpu.core_type = #tpu.core_type<tc>, window_params = [{transform_indices = @transform_0, window_bounds = array<i64: 32, 32>}, {transform_indices = @transform_1, window_bounds = array<i64: 32, 32>}, {pipeline_mode = #tpu.pipeline_mode<synchronous>, transform_indices = @transform_2, window_bounds = array<i64: 32, 96>}, {pipeline_mode = #tpu.pipeline_mode<synchronous>, transform_indices = @transform_3, window_bounds = array<i64: 1, 96>}, {pipeline_mode = #tpu.pipeline_mode<synchronous>, transform_indices = @transform_4, window_bounds = array<i64: 32, 192>}, {pipeline_mode = #tpu.pipeline_mode<synchronous>, transform_indices = @transform_5, window_bounds = array<i64: 32, 96>}, {pipeline_mode = #tpu.pipeline_mode<synchronous>, transform_indices = @transform_6, window_bounds = array<i64: 1, 96>}, {pipeline_mode = #tpu.pipeline_mode<synchronous>, transform_indices = @transform_7, window_bounds = array<i64: 1, 32>}, {pipeline_mode = #tpu.pipeline_mode<synchronous>, transform_indices = @transform_8, window_bounds = array<i64: 1, 32>}, {pipeline_mode = #tpu.pipeline_mode<synchronous>, transform_indices = @transform_9, window_bounds = array<i64: 32, 128>}, {pipeline_mode = #tpu.pipeline_mode<synchronous>, transform_indices = @transform_10, window_bounds = array<i64: 1, 128>}, {pipeline_mode = #tpu.pipeline_mode<synchronous>, transform_indices = @transform_11, window_bounds = array<i64: 32, 128>}, {pipeline_mode = #tpu.pipeline_mode<synchronous>, transform_indices = @transform_12, window_bounds = array<i64: 1, 128>}, {transform_indices = @transform_13, window_bounds = array<i64: 32, 128>}]} {
    %c0_i32 = arith.constant 0 : i32
    %0 = arith.cmpi eq, %arg0, %c0_i32 : i32
    %1 = arith.extui %0 : i1 to i32
    %c0_i32_0 = arith.constant 0 : i32
    %2 = arith.cmpi ne, %1, %c0_i32_0 : i32
    scf.if %2 {
      %cst_96 = arith.constant 0.000000e+00 : f32
      %322 = vector.broadcast %cst_96 : f32 to vector<8x32xf32>
      %c0_97 = arith.constant 0 : index
      %c0_98 = arith.constant 0 : index
      %323 = vector.load %arg17[%c0_97, %c0_98] : memref<8x32xf32, #tpu.memory_space<vmem>>, vector<8x32xf32>
      tpu.vector_store %arg17[%c0_97, %c0_98], %322 {strides = array<i32>} : memref<8x32xf32, #tpu.memory_space<vmem>>, vector<8x32xf32>,
      %cst_99 = arith.constant 0.000000e+00 : f32
      %324 = vector.broadcast %cst_99 : f32 to vector<8x32xf32>
      %c0_100 = arith.constant 0 : index
      %c0_101 = arith.constant 0 : index
      %325 = vector.load %arg18[%c0_100, %c0_101] : memref<8x32xf32, #tpu.memory_space<vmem>>, vector<8x32xf32>
      tpu.vector_store %arg18[%c0_100, %c0_101], %324 {strides = array<i32>} : memref<8x32xf32, #tpu.memory_space<vmem>>, vector<8x32xf32>,
    } else {
    }
    %c0 = arith.constant 0 : index
    %c0_1 = arith.constant 0 : index
    %3 = vector.load %arg1[%c0, %c0_1] : memref<32x32xf32, #tpu.memory_space<vmem>>, vector<32x32xf32>
    %c0_2 = arith.constant 0 : index
    %c0_3 = arith.constant 0 : index
    %4 = vector.load %arg3[%c0_2, %c0_3] : memref<32x96xf32, #tpu.memory_space<vmem>>, vector<32x96xf32>
    %cst = arith.constant dense<0.000000e+00> : vector<32x96xf32>
    %5 = tpu.matmul %3, %4, %cst {dimension_numbers = #tpu.dot_dimension_numbers<[1], [0], [0], [1], [0, 0, 1, 1], [], []>} : vector<32x32xf32>, vector<32x96xf32>, vector<32x96xf32> -> vector<32x96xf32>
    %c0_4 = arith.constant 0 : index
    %c0_5 = arith.constant 0 : index
    %6 = vector.load %arg4[%c0_4, %c0_5] : memref<1x96xf32, #tpu.memory_space<vmem>>, vector<1x96xf32>
    %7 = vector.broadcast %6 : vector<1x96xf32> to vector<32x96xf32>
    %8 = arith.addf %5, %7 : vector<32x96xf32>
    %c0_6 = arith.constant 0 : index
    %c0_7 = arith.constant 0 : index
    %9 = vector.load %arg15[%c0_6, %c0_7] : memref<32x96xf32, #tpu.memory_space<vmem>>, vector<32x96xf32>
    tpu.vector_store %arg15[%c0_6, %c0_7], %8 {strides = array<i32>} : memref<32x96xf32, #tpu.memory_space<vmem>>, vector<32x96xf32>,
    %c0_8 = arith.constant 0 : index
    %c0_9 = arith.constant 0 : index
    %10 = vector.load %arg5[%c0_8, %c0_9] : memref<32x192xf32, #tpu.memory_space<vmem>>, vector<32x192xf32>
    %c0_10 = arith.constant 0 : index
    %c0_11 = arith.constant 0 : index
    %11 = vector.load %arg6[%c0_10, %c0_11] : memref<32x96xf32, #tpu.memory_space<vmem>>, vector<32x96xf32>
    %c0_12 = arith.constant 0 : index
    %c0_13 = arith.constant 0 : index
    %12 = vector.load %arg7[%c0_12, %c0_13] : memref<1x96xf32, #tpu.memory_space<vmem>>, vector<1x96xf32>
    %13 = vector.shape_cast %12 : vector<1x96xf32> to vector<1x96xf32>
    %14 = vector.broadcast %13 : vector<1x96xf32> to vector<8x96xf32>
    %c0_14 = arith.constant 0 : index
    %c0_15 = arith.constant 0 : index
    %15 = vector.load %arg8[%c0_14, %c0_15] : memref<1x32xf32, #tpu.memory_space<vmem>>, vector<1x32xf32>
    %16 = vector.shape_cast %15 : vector<1x32xf32> to vector<1x32xf32>
    %17 = vector.broadcast %16 : vector<1x32xf32> to vector<8x32xf32>
    %c0_16 = arith.constant 0 : index
    %c0_17 = arith.constant 0 : index
    %18 = vector.load %arg9[%c0_16, %c0_17] : memref<1x32xf32, #tpu.memory_space<vmem>>, vector<1x32xf32>
    %19 = vector.shape_cast %18 : vector<1x32xf32> to vector<1x32xf32>
    %20 = vector.broadcast %19 : vector<1x32xf32> to vector<8x32xf32>
    %c0_18 = arith.constant 0 : index
    %c0_19 = arith.constant 0 : index
    %21 = vector.load %arg17[%c0_18, %c0_19] : memref<8x32xf32, #tpu.memory_space<vmem>>, vector<8x32xf32>
    %c0_20 = arith.constant 0 : index
    %c0_21 = arith.constant 0 : index
    %22 = vector.load %arg18[%c0_20, %c0_21] : memref<8x32xf32, #tpu.memory_space<vmem>>, vector<8x32xf32>
    %cst_22 = arith.constant dense<0.000000e+00> : vector<8x192xf32>
    %23 = tpu.matmul %21, %10, %cst_22 {dimension_numbers = #tpu.dot_dimension_numbers<[1], [0], [0], [1], [0, 0, 1, 1], [], []>} : vector<8x32xf32>, vector<32x192xf32>, vector<8x192xf32> -> vector<8x192xf32>
    %c0_23 = arith.constant 0 : index
    %c0_24 = arith.constant 0 : index
    %24 = vector.load %arg15[%c0_23, %c0_24] : memref<32x96xf32, #tpu.memory_space<vmem>>, vector<8x96xf32>
    %25 = vector.extract_strided_slice %23 {offsets = [0, 0], sizes = [8, 96], strides = [1, 1]} : vector<8x192xf32> to vector<8x96xf32>
    %26 = vector.extract_strided_slice %24 {offsets = [0, 0], sizes = [8, 32], strides = [1, 1]} : vector<8x96xf32> to vector<8x32xf32>
    %27 = vector.extract_strided_slice %25 {offsets = [0, 0], sizes = [8, 32], strides = [1, 1]} : vector<8x96xf32> to vector<8x32xf32>
    %28 = arith.addf %26, %27 : vector<8x32xf32>
    %29 = arith.negf %28 : vector<8x32xf32>
    %30 = math.exp %29 : vector<8x32xf32>
    %cst_25 = arith.constant 1.000000e+00 : f32
    %31 = vector.broadcast %cst_25 : f32 to vector<8x32xf32>
    %32 = arith.addf %31, %30 : vector<8x32xf32>
    %33 = arith.divf %31, %32 : vector<8x32xf32>
    %34 = vector.extract_strided_slice %24 {offsets = [0, 32], sizes = [8, 32], strides = [1, 1]} : vector<8x96xf32> to vector<8x32xf32>
    %35 = vector.extract_strided_slice %25 {offsets = [0, 32], sizes = [8, 32], strides = [1, 1]} : vector<8x96xf32> to vector<8x32xf32>
    %36 = arith.addf %34, %35 : vector<8x32xf32>
    %37 = arith.negf %36 : vector<8x32xf32>
    %38 = math.exp %37 : vector<8x32xf32>
    %cst_26 = arith.constant 1.000000e+00 : f32
    %39 = vector.broadcast %cst_26 : f32 to vector<8x32xf32>
    %40 = arith.addf %39, %38 : vector<8x32xf32>
    %41 = arith.divf %39, %40 : vector<8x32xf32>
    %42 = vector.extract_strided_slice %24 {offsets = [0, 64], sizes = [8, 32], strides = [1, 1]} : vector<8x96xf32> to vector<8x32xf32>
    %43 = vector.extract_strided_slice %25 {offsets = [0, 64], sizes = [8, 32], strides = [1, 1]} : vector<8x96xf32> to vector<8x32xf32>
    %44 = arith.addf %43, %17 : vector<8x32xf32>
    %45 = arith.mulf %33, %44 : vector<8x32xf32>
    %46 = arith.addf %42, %45 : vector<8x32xf32>
    %47 = math.tanh %46 : vector<8x32xf32>
    %cst_27 = arith.constant 1.000000e+00 : f32
    %48 = vector.broadcast %cst_27 : f32 to vector<8x32xf32>
    %49 = arith.subf %48, %41 : vector<8x32xf32>
    %50 = arith.mulf %49, %47 : vector<8x32xf32>
    %51 = arith.mulf %41, %21 : vector<8x32xf32>
    %52 = arith.addf %50, %51 : vector<8x32xf32>
    %c0_i32_28 = arith.constant 0 : i32
    %c8_i32 = arith.constant 8 : i32
    %53 = arith.muli %c0_i32_28, %c8_i32 : i32
    %54 = tpu.assume_multiple %53, 8 : i32
    %c1_i32 = arith.constant 1 : i32
    %55 = arith.addi %c0_i32_28, %c1_i32 : i32
    %c8_i32_29 = arith.constant 8 : i32
    %56 = arith.muli %55, %c8_i32_29 : i32
    %57 = tpu.assume_multiple %56, 8 : i32
    %cst_30 = arith.constant dense<0.000000e+00> : vector<8x192xf32>
    %58 = tpu.matmul %52, %10, %cst_30 {dimension_numbers = #tpu.dot_dimension_numbers<[1], [0], [0], [1], [0, 0, 1, 1], [], []>} : vector<8x32xf32>, vector<32x192xf32>, vector<8x192xf32> -> vector<8x192xf32>
    %cst_31 = arith.constant dense<0.000000e+00> : vector<8x96xf32>
    %59 = tpu.matmul %22, %11, %cst_31 {dimension_numbers = #tpu.dot_dimension_numbers<[1], [0], [0], [1], [0, 0, 1, 1], [], []>} : vector<8x32xf32>, vector<32x96xf32>, vector<8x96xf32> -> vector<8x96xf32>
    %60 = arith.index_cast %57 : i32 to index
    %c0_32 = arith.constant 0 : index
    %61 = vector.load %arg15[%60, %c0_32] : memref<32x96xf32, #tpu.memory_space<vmem>>, vector<8x96xf32>
    %62 = vector.extract_strided_slice %58 {offsets = [0, 0], sizes = [8, 96], strides = [1, 1]} : vector<8x192xf32> to vector<8x96xf32>
    %63 = vector.extract_strided_slice %61 {offsets = [0, 0], sizes = [8, 32], strides = [1, 1]} : vector<8x96xf32> to vector<8x32xf32>
    %64 = vector.extract_strided_slice %62 {offsets = [0, 0], sizes = [8, 32], strides = [1, 1]} : vector<8x96xf32> to vector<8x32xf32>
    %65 = arith.addf %63, %64 : vector<8x32xf32>
    %66 = arith.negf %65 : vector<8x32xf32>
    %67 = math.exp %66 : vector<8x32xf32>
    %cst_33 = arith.constant 1.000000e+00 : f32
    %68 = vector.broadcast %cst_33 : f32 to vector<8x32xf32>
    %69 = arith.addf %68, %67 : vector<8x32xf32>
    %70 = arith.divf %68, %69 : vector<8x32xf32>
    %71 = vector.extract_strided_slice %61 {offsets = [0, 32], sizes = [8, 32], strides = [1, 1]} : vector<8x96xf32> to vector<8x32xf32>
    %72 = vector.extract_strided_slice %62 {offsets = [0, 32], sizes = [8, 32], strides = [1, 1]} : vector<8x96xf32> to vector<8x32xf32>
    %73 = arith.addf %71, %72 : vector<8x32xf32>
    %74 = arith.negf %73 : vector<8x32xf32>
    %75 = math.exp %74 : vector<8x32xf32>
    %cst_34 = arith.constant 1.000000e+00 : f32
    %76 = vector.broadcast %cst_34 : f32 to vector<8x32xf32>
    %77 = arith.addf %76, %75 : vector<8x32xf32>
    %78 = arith.divf %76, %77 : vector<8x32xf32>
    %79 = vector.extract_strided_slice %61 {offsets = [0, 64], sizes = [8, 32], strides = [1, 1]} : vector<8x96xf32> to vector<8x32xf32>
    %80 = vector.extract_strided_slice %62 {offsets = [0, 64], sizes = [8, 32], strides = [1, 1]} : vector<8x96xf32> to vector<8x32xf32>
    %81 = arith.addf %80, %17 : vector<8x32xf32>
    %82 = arith.mulf %70, %81 : vector<8x32xf32>
    %83 = arith.addf %79, %82 : vector<8x32xf32>
    %84 = math.tanh %83 : vector<8x32xf32>
    %cst_35 = arith.constant 1.000000e+00 : f32
    %85 = vector.broadcast %cst_35 : f32 to vector<8x32xf32>
    %86 = arith.subf %85, %78 : vector<8x32xf32>
    %87 = arith.mulf %86, %84 : vector<8x32xf32>
    %88 = arith.mulf %78, %52 : vector<8x32xf32>
    %89 = arith.addf %87, %88 : vector<8x32xf32>
    %90 = vector.extract_strided_slice %58 {offsets = [0, 96], sizes = [8, 96], strides = [1, 1]} : vector<8x192xf32> to vector<8x96xf32>
    %91 = arith.addf %90, %14 : vector<8x96xf32>
    %92 = vector.extract_strided_slice %91 {offsets = [0, 0], sizes = [8, 32], strides = [1, 1]} : vector<8x96xf32> to vector<8x32xf32>
    %93 = vector.extract_strided_slice %59 {offsets = [0, 0], sizes = [8, 32], strides = [1, 1]} : vector<8x96xf32> to vector<8x32xf32>
    %94 = arith.addf %92, %93 : vector<8x32xf32>
    %95 = arith.negf %94 : vector<8x32xf32>
    %96 = math.exp %95 : vector<8x32xf32>
    %cst_36 = arith.constant 1.000000e+00 : f32
    %97 = vector.broadcast %cst_36 : f32 to vector<8x32xf32>
    %98 = arith.addf %97, %96 : vector<8x32xf32>
    %99 = arith.divf %97, %98 : vector<8x32xf32>
    %100 = vector.extract_strided_slice %91 {offsets = [0, 32], sizes = [8, 32], strides = [1, 1]} : vector<8x96xf32> to vector<8x32xf32>
    %101 = vector.extract_strided_slice %59 {offsets = [0, 32], sizes = [8, 32], strides = [1, 1]} : vector<8x96xf32> to vector<8x32xf32>
    %102 = arith.addf %100, %101 : vector<8x32xf32>
    %103 = arith.negf %102 : vector<8x32xf32>
    %104 = math.exp %103 : vector<8x32xf32>
    %cst_37 = arith.constant 1.000000e+00 : f32
    %105 = vector.broadcast %cst_37 : f32 to vector<8x32xf32>
    %106 = arith.addf %105, %104 : vector<8x32xf32>
    %107 = arith.divf %105, %106 : vector<8x32xf32>
    %108 = vector.extract_strided_slice %91 {offsets = [0, 64], sizes = [8, 32], strides = [1, 1]} : vector<8x96xf32> to vector<8x32xf32>
    %109 = vector.extract_strided_slice %59 {offsets = [0, 64], sizes = [8, 32], strides = [1, 1]} : vector<8x96xf32> to vector<8x32xf32>
    %110 = arith.addf %109, %20 : vector<8x32xf32>
    %111 = arith.mulf %99, %110 : vector<8x32xf32>
    %112 = arith.addf %108, %111 : vector<8x32xf32>
    %113 = math.tanh %112 : vector<8x32xf32>
    %cst_38 = arith.constant 1.000000e+00 : f32
    %114 = vector.broadcast %cst_38 : f32 to vector<8x32xf32>
    %115 = arith.subf %114, %107 : vector<8x32xf32>
    %116 = arith.mulf %115, %113 : vector<8x32xf32>
    %117 = arith.mulf %107, %22 : vector<8x32xf32>
    %118 = arith.addf %116, %117 : vector<8x32xf32>
    %119 = arith.addf %52, %118 : vector<8x32xf32>
    %120 = arith.index_cast %54 : i32 to index
    %c0_39 = arith.constant 0 : index
    %121 = vector.load %arg16[%120, %c0_39] : memref<32x32xf32, #tpu.memory_space<vmem>>, vector<8x32xf32>
    tpu.vector_store %arg16[%120, %c0_39], %119 {strides = array<i32>} : memref<32x32xf32, #tpu.memory_space<vmem>>, vector<8x32xf32>,
    %c1_i32_40 = arith.constant 1 : i32
    %c8_i32_41 = arith.constant 8 : i32
    %122 = arith.muli %c1_i32_40, %c8_i32_41 : i32
    %123 = tpu.assume_multiple %122, 8 : i32
    %c1_i32_42 = arith.constant 1 : i32
    %124 = arith.addi %c1_i32_40, %c1_i32_42 : i32
    %c8_i32_43 = arith.constant 8 : i32
    %125 = arith.muli %124, %c8_i32_43 : i32
    %126 = tpu.assume_multiple %125, 8 : i32
    %cst_44 = arith.constant dense<0.000000e+00> : vector<8x192xf32>
    %127 = tpu.matmul %89, %10, %cst_44 {dimension_numbers = #tpu.dot_dimension_numbers<[1], [0], [0], [1], [0, 0, 1, 1], [], []>} : vector<8x32xf32>, vector<32x192xf32>, vector<8x192xf32> -> vector<8x192xf32>
    %cst_45 = arith.constant dense<0.000000e+00> : vector<8x96xf32>
    %128 = tpu.matmul %118, %11, %cst_45 {dimension_numbers = #tpu.dot_dimension_numbers<[1], [0], [0], [1], [0, 0, 1, 1], [], []>} : vector<8x32xf32>, vector<32x96xf32>, vector<8x96xf32> -> vector<8x96xf32>
    %129 = arith.index_cast %126 : i32 to index
    %c0_46 = arith.constant 0 : index
    %130 = vector.load %arg15[%129, %c0_46] : memref<32x96xf32, #tpu.memory_space<vmem>>, vector<8x96xf32>
    %131 = vector.extract_strided_slice %127 {offsets = [0, 0], sizes = [8, 96], strides = [1, 1]} : vector<8x192xf32> to vector<8x96xf32>
    %132 = vector.extract_strided_slice %130 {offsets = [0, 0], sizes = [8, 32], strides = [1, 1]} : vector<8x96xf32> to vector<8x32xf32>
    %133 = vector.extract_strided_slice %131 {offsets = [0, 0], sizes = [8, 32], strides = [1, 1]} : vector<8x96xf32> to vector<8x32xf32>
    %134 = arith.addf %132, %133 : vector<8x32xf32>
    %135 = arith.negf %134 : vector<8x32xf32>
    %136 = math.exp %135 : vector<8x32xf32>
    %cst_47 = arith.constant 1.000000e+00 : f32
    %137 = vector.broadcast %cst_47 : f32 to vector<8x32xf32>
    %138 = arith.addf %137, %136 : vector<8x32xf32>
    %139 = arith.divf %137, %138 : vector<8x32xf32>
    %140 = vector.extract_strided_slice %130 {offsets = [0, 32], sizes = [8, 32], strides = [1, 1]} : vector<8x96xf32> to vector<8x32xf32>
    %141 = vector.extract_strided_slice %131 {offsets = [0, 32], sizes = [8, 32], strides = [1, 1]} : vector<8x96xf32> to vector<8x32xf32>
    %142 = arith.addf %140, %141 : vector<8x32xf32>
    %143 = arith.negf %142 : vector<8x32xf32>
    %144 = math.exp %143 : vector<8x32xf32>
    %cst_48 = arith.constant 1.000000e+00 : f32
    %145 = vector.broadcast %cst_48 : f32 to vector<8x32xf32>
    %146 = arith.addf %145, %144 : vector<8x32xf32>
    %147 = arith.divf %145, %146 : vector<8x32xf32>
    %148 = vector.extract_strided_slice %130 {offsets = [0, 64], sizes = [8, 32], strides = [1, 1]} : vector<8x96xf32> to vector<8x32xf32>
    %149 = vector.extract_strided_slice %131 {offsets = [0, 64], sizes = [8, 32], strides = [1, 1]} : vector<8x96xf32> to vector<8x32xf32>
    %150 = arith.addf %149, %17 : vector<8x32xf32>
    %151 = arith.mulf %139, %150 : vector<8x32xf32>
    %152 = arith.addf %148, %151 : vector<8x32xf32>
    %153 = math.tanh %152 : vector<8x32xf32>
    %cst_49 = arith.constant 1.000000e+00 : f32
    %154 = vector.broadcast %cst_49 : f32 to vector<8x32xf32>
    %155 = arith.subf %154, %147 : vector<8x32xf32>
    %156 = arith.mulf %155, %153 : vector<8x32xf32>
    %157 = arith.mulf %147, %89 : vector<8x32xf32>
    %158 = arith.addf %156, %157 : vector<8x32xf32>
    %159 = vector.extract_strided_slice %127 {offsets = [0, 96], sizes = [8, 96], strides = [1, 1]} : vector<8x192xf32> to vector<8x96xf32>
    %160 = arith.addf %159, %14 : vector<8x96xf32>
    %161 = vector.extract_strided_slice %160 {offsets = [0, 0], sizes = [8, 32], strides = [1, 1]} : vector<8x96xf32> to vector<8x32xf32>
    %162 = vector.extract_strided_slice %128 {offsets = [0, 0], sizes = [8, 32], strides = [1, 1]} : vector<8x96xf32> to vector<8x32xf32>
    %163 = arith.addf %161, %162 : vector<8x32xf32>
    %164 = arith.negf %163 : vector<8x32xf32>
    %165 = math.exp %164 : vector<8x32xf32>
    %cst_50 = arith.constant 1.000000e+00 : f32
    %166 = vector.broadcast %cst_50 : f32 to vector<8x32xf32>
    %167 = arith.addf %166, %165 : vector<8x32xf32>
    %168 = arith.divf %166, %167 : vector<8x32xf32>
    %169 = vector.extract_strided_slice %160 {offsets = [0, 32], sizes = [8, 32], strides = [1, 1]} : vector<8x96xf32> to vector<8x32xf32>
    %170 = vector.extract_strided_slice %128 {offsets = [0, 32], sizes = [8, 32], strides = [1, 1]} : vector<8x96xf32> to vector<8x32xf32>
    %171 = arith.addf %169, %170 : vector<8x32xf32>
    %172 = arith.negf %171 : vector<8x32xf32>
    %173 = math.exp %172 : vector<8x32xf32>
    %cst_51 = arith.constant 1.000000e+00 : f32
    %174 = vector.broadcast %cst_51 : f32 to vector<8x32xf32>
    %175 = arith.addf %174, %173 : vector<8x32xf32>
    %176 = arith.divf %174, %175 : vector<8x32xf32>
    %177 = vector.extract_strided_slice %160 {offsets = [0, 64], sizes = [8, 32], strides = [1, 1]} : vector<8x96xf32> to vector<8x32xf32>
    %178 = vector.extract_strided_slice %128 {offsets = [0, 64], sizes = [8, 32], strides = [1, 1]} : vector<8x96xf32> to vector<8x32xf32>
    %179 = arith.addf %178, %20 : vector<8x32xf32>
    %180 = arith.mulf %168, %179 : vector<8x32xf32>
    %181 = arith.addf %177, %180 : vector<8x32xf32>
    %182 = math.tanh %181 : vector<8x32xf32>
    %cst_52 = arith.constant 1.000000e+00 : f32
    %183 = vector.broadcast %cst_52 : f32 to vector<8x32xf32>
    %184 = arith.subf %183, %176 : vector<8x32xf32>
    %185 = arith.mulf %184, %182 : vector<8x32xf32>
    %186 = arith.mulf %176, %118 : vector<8x32xf32>
    %187 = arith.addf %185, %186 : vector<8x32xf32>
    %188 = arith.addf %89, %187 : vector<8x32xf32>
    %189 = arith.index_cast %123 : i32 to index
    %c0_53 = arith.constant 0 : index
    %190 = vector.load %arg16[%189, %c0_53] : memref<32x32xf32, #tpu.memory_space<vmem>>, vector<8x32xf32>
    tpu.vector_store %arg16[%189, %c0_53], %188 {strides = array<i32>} : memref<32x32xf32, #tpu.memory_space<vmem>>, vector<8x32xf32>,
    %c2_i32 = arith.constant 2 : i32
    %c8_i32_54 = arith.constant 8 : i32
    %191 = arith.muli %c2_i32, %c8_i32_54 : i32
    %192 = tpu.assume_multiple %191, 8 : i32
    %c1_i32_55 = arith.constant 1 : i32
    %193 = arith.addi %c2_i32, %c1_i32_55 : i32
    %c8_i32_56 = arith.constant 8 : i32
    %194 = arith.muli %193, %c8_i32_56 : i32
    %195 = tpu.assume_multiple %194, 8 : i32
    %cst_57 = arith.constant dense<0.000000e+00> : vector<8x192xf32>
    %196 = tpu.matmul %158, %10, %cst_57 {dimension_numbers = #tpu.dot_dimension_numbers<[1], [0], [0], [1], [0, 0, 1, 1], [], []>} : vector<8x32xf32>, vector<32x192xf32>, vector<8x192xf32> -> vector<8x192xf32>
    %cst_58 = arith.constant dense<0.000000e+00> : vector<8x96xf32>
    %197 = tpu.matmul %187, %11, %cst_58 {dimension_numbers = #tpu.dot_dimension_numbers<[1], [0], [0], [1], [0, 0, 1, 1], [], []>} : vector<8x32xf32>, vector<32x96xf32>, vector<8x96xf32> -> vector<8x96xf32>
    %198 = arith.index_cast %195 : i32 to index
    %c0_59 = arith.constant 0 : index
    %199 = vector.load %arg15[%198, %c0_59] : memref<32x96xf32, #tpu.memory_space<vmem>>, vector<8x96xf32>
    %200 = vector.extract_strided_slice %196 {offsets = [0, 0], sizes = [8, 96], strides = [1, 1]} : vector<8x192xf32> to vector<8x96xf32>
    %201 = vector.extract_strided_slice %199 {offsets = [0, 0], sizes = [8, 32], strides = [1, 1]} : vector<8x96xf32> to vector<8x32xf32>
    %202 = vector.extract_strided_slice %200 {offsets = [0, 0], sizes = [8, 32], strides = [1, 1]} : vector<8x96xf32> to vector<8x32xf32>
    %203 = arith.addf %201, %202 : vector<8x32xf32>
    %204 = arith.negf %203 : vector<8x32xf32>
    %205 = math.exp %204 : vector<8x32xf32>
    %cst_60 = arith.constant 1.000000e+00 : f32
    %206 = vector.broadcast %cst_60 : f32 to vector<8x32xf32>
    %207 = arith.addf %206, %205 : vector<8x32xf32>
    %208 = arith.divf %206, %207 : vector<8x32xf32>
    %209 = vector.extract_strided_slice %199 {offsets = [0, 32], sizes = [8, 32], strides = [1, 1]} : vector<8x96xf32> to vector<8x32xf32>
    %210 = vector.extract_strided_slice %200 {offsets = [0, 32], sizes = [8, 32], strides = [1, 1]} : vector<8x96xf32> to vector<8x32xf32>
    %211 = arith.addf %209, %210 : vector<8x32xf32>
    %212 = arith.negf %211 : vector<8x32xf32>
    %213 = math.exp %212 : vector<8x32xf32>
    %cst_61 = arith.constant 1.000000e+00 : f32
    %214 = vector.broadcast %cst_61 : f32 to vector<8x32xf32>
    %215 = arith.addf %214, %213 : vector<8x32xf32>
    %216 = arith.divf %214, %215 : vector<8x32xf32>
    %217 = vector.extract_strided_slice %199 {offsets = [0, 64], sizes = [8, 32], strides = [1, 1]} : vector<8x96xf32> to vector<8x32xf32>
    %218 = vector.extract_strided_slice %200 {offsets = [0, 64], sizes = [8, 32], strides = [1, 1]} : vector<8x96xf32> to vector<8x32xf32>
    %219 = arith.addf %218, %17 : vector<8x32xf32>
    %220 = arith.mulf %208, %219 : vector<8x32xf32>
    %221 = arith.addf %217, %220 : vector<8x32xf32>
    %222 = math.tanh %221 : vector<8x32xf32>
    %cst_62 = arith.constant 1.000000e+00 : f32
    %223 = vector.broadcast %cst_62 : f32 to vector<8x32xf32>
    %224 = arith.subf %223, %216 : vector<8x32xf32>
    %225 = arith.mulf %224, %222 : vector<8x32xf32>
    %226 = arith.mulf %216, %158 : vector<8x32xf32>
    %227 = arith.addf %225, %226 : vector<8x32xf32>
    %228 = vector.extract_strided_slice %196 {offsets = [0, 96], sizes = [8, 96], strides = [1, 1]} : vector<8x192xf32> to vector<8x96xf32>
    %229 = arith.addf %228, %14 : vector<8x96xf32>
    %230 = vector.extract_strided_slice %229 {offsets = [0, 0], sizes = [8, 32], strides = [1, 1]} : vector<8x96xf32> to vector<8x32xf32>
    %231 = vector.extract_strided_slice %197 {offsets = [0, 0], sizes = [8, 32], strides = [1, 1]} : vector<8x96xf32> to vector<8x32xf32>
    %232 = arith.addf %230, %231 : vector<8x32xf32>
    %233 = arith.negf %232 : vector<8x32xf32>
    %234 = math.exp %233 : vector<8x32xf32>
    %cst_63 = arith.constant 1.000000e+00 : f32
    %235 = vector.broadcast %cst_63 : f32 to vector<8x32xf32>
    %236 = arith.addf %235, %234 : vector<8x32xf32>
    %237 = arith.divf %235, %236 : vector<8x32xf32>
    %238 = vector.extract_strided_slice %229 {offsets = [0, 32], sizes = [8, 32], strides = [1, 1]} : vector<8x96xf32> to vector<8x32xf32>
    %239 = vector.extract_strided_slice %197 {offsets = [0, 32], sizes = [8, 32], strides = [1, 1]} : vector<8x96xf32> to vector<8x32xf32>
    %240 = arith.addf %238, %239 : vector<8x32xf32>
    %241 = arith.negf %240 : vector<8x32xf32>
    %242 = math.exp %241 : vector<8x32xf32>
    %cst_64 = arith.constant 1.000000e+00 : f32
    %243 = vector.broadcast %cst_64 : f32 to vector<8x32xf32>
    %244 = arith.addf %243, %242 : vector<8x32xf32>
    %245 = arith.divf %243, %244 : vector<8x32xf32>
    %246 = vector.extract_strided_slice %229 {offsets = [0, 64], sizes = [8, 32], strides = [1, 1]} : vector<8x96xf32> to vector<8x32xf32>
    %247 = vector.extract_strided_slice %197 {offsets = [0, 64], sizes = [8, 32], strides = [1, 1]} : vector<8x96xf32> to vector<8x32xf32>
    %248 = arith.addf %247, %20 : vector<8x32xf32>
    %249 = arith.mulf %237, %248 : vector<8x32xf32>
    %250 = arith.addf %246, %249 : vector<8x32xf32>
    %251 = math.tanh %250 : vector<8x32xf32>
    %cst_65 = arith.constant 1.000000e+00 : f32
    %252 = vector.broadcast %cst_65 : f32 to vector<8x32xf32>
    %253 = arith.subf %252, %245 : vector<8x32xf32>
    %254 = arith.mulf %253, %251 : vector<8x32xf32>
    %255 = arith.mulf %245, %187 : vector<8x32xf32>
    %256 = arith.addf %254, %255 : vector<8x32xf32>
    %257 = arith.addf %158, %256 : vector<8x32xf32>
    %258 = arith.index_cast %192 : i32 to index
    %c0_66 = arith.constant 0 : index
    %259 = vector.load %arg16[%258, %c0_66] : memref<32x32xf32, #tpu.memory_space<vmem>>, vector<8x32xf32>
    tpu.vector_store %arg16[%258, %c0_66], %257 {strides = array<i32>} : memref<32x32xf32, #tpu.memory_space<vmem>>, vector<8x32xf32>,
    %c3_i32 = arith.constant 3 : i32
    %cst_67 = arith.constant dense<0.000000e+00> : vector<8x192xf32>
    %260 = tpu.matmul %227, %10, %cst_67 {dimension_numbers = #tpu.dot_dimension_numbers<[1], [0], [0], [1], [0, 0, 1, 1], [], []>} : vector<8x32xf32>, vector<32x192xf32>, vector<8x192xf32> -> vector<8x192xf32>
    %cst_68 = arith.constant dense<0.000000e+00> : vector<8x96xf32>
    %261 = tpu.matmul %256, %11, %cst_68 {dimension_numbers = #tpu.dot_dimension_numbers<[1], [0], [0], [1], [0, 0, 1, 1], [], []>} : vector<8x32xf32>, vector<32x96xf32>, vector<8x96xf32> -> vector<8x96xf32>
    %262 = vector.extract_strided_slice %260 {offsets = [0, 96], sizes = [8, 96], strides = [1, 1]} : vector<8x192xf32> to vector<8x96xf32>
    %263 = arith.addf %262, %14 : vector<8x96xf32>
    %264 = vector.extract_strided_slice %263 {offsets = [0, 0], sizes = [8, 32], strides = [1, 1]} : vector<8x96xf32> to vector<8x32xf32>
    %265 = vector.extract_strided_slice %261 {offsets = [0, 0], sizes = [8, 32], strides = [1, 1]} : vector<8x96xf32> to vector<8x32xf32>
    %266 = arith.addf %264, %265 : vector<8x32xf32>
    %267 = arith.negf %266 : vector<8x32xf32>
    %268 = math.exp %267 : vector<8x32xf32>
    %cst_69 = arith.constant 1.000000e+00 : f32
    %269 = vector.broadcast %cst_69 : f32 to vector<8x32xf32>
    %270 = arith.addf %269, %268 : vector<8x32xf32>
    %271 = arith.divf %269, %270 : vector<8x32xf32>
    %272 = vector.extract_strided_slice %263 {offsets = [0, 32], sizes = [8, 32], strides = [1, 1]} : vector<8x96xf32> to vector<8x32xf32>
    %273 = vector.extract_strided_slice %261 {offsets = [0, 32], sizes = [8, 32], strides = [1, 1]} : vector<8x96xf32> to vector<8x32xf32>
    %274 = arith.addf %272, %273 : vector<8x32xf32>
    %275 = arith.negf %274 : vector<8x32xf32>
    %276 = math.exp %275 : vector<8x32xf32>
    %cst_70 = arith.constant 1.000000e+00 : f32
    %277 = vector.broadcast %cst_70 : f32 to vector<8x32xf32>
    %278 = arith.addf %277, %276 : vector<8x32xf32>
    %279 = arith.divf %277, %278 : vector<8x32xf32>
    %280 = vector.extract_strided_slice %263 {offsets = [0, 64], sizes = [8, 32], strides = [1, 1]} : vector<8x96xf32> to vector<8x32xf32>
    %281 = vector.extract_strided_slice %261 {offsets = [0, 64], sizes = [8, 32], strides = [1, 1]} : vector<8x96xf32> to vector<8x32xf32>
    %282 = arith.addf %281, %20 : vector<8x32xf32>
    %283 = arith.mulf %271, %282 : vector<8x32xf32>
    %284 = arith.addf %280, %283 : vector<8x32xf32>
    %285 = math.tanh %284 : vector<8x32xf32>
    %cst_71 = arith.constant 1.000000e+00 : f32
    %286 = vector.broadcast %cst_71 : f32 to vector<8x32xf32>
    %287 = arith.subf %286, %279 : vector<8x32xf32>
    %288 = arith.mulf %287, %285 : vector<8x32xf32>
    %289 = arith.mulf %279, %256 : vector<8x32xf32>
    %290 = arith.addf %288, %289 : vector<8x32xf32>
    %c24_i32 = arith.constant 24 : i32
    %291 = tpu.assume_multiple %c24_i32, 8 : i32
    %292 = arith.addf %227, %290 : vector<8x32xf32>
    %293 = arith.index_cast %291 : i32 to index
    %c0_72 = arith.constant 0 : index
    %294 = vector.load %arg16[%293, %c0_72] : memref<32x32xf32, #tpu.memory_space<vmem>>, vector<8x32xf32>
    tpu.vector_store %arg16[%293, %c0_72], %292 {strides = array<i32>} : memref<32x32xf32, #tpu.memory_space<vmem>>, vector<8x32xf32>,
    %c0_73 = arith.constant 0 : index
    %c0_74 = arith.constant 0 : index
    %295 = vector.load %arg17[%c0_73, %c0_74] : memref<8x32xf32, #tpu.memory_space<vmem>>, vector<8x32xf32>
    tpu.vector_store %arg17[%c0_73, %c0_74], %227 {strides = array<i32>} : memref<8x32xf32, #tpu.memory_space<vmem>>, vector<8x32xf32>,
    %c0_75 = arith.constant 0 : index
    %c0_76 = arith.constant 0 : index
    %296 = vector.load %arg18[%c0_75, %c0_76] : memref<8x32xf32, #tpu.memory_space<vmem>>, vector<8x32xf32>
    tpu.vector_store %arg18[%c0_75, %c0_76], %290 {strides = array<i32>} : memref<8x32xf32, #tpu.memory_space<vmem>>, vector<8x32xf32>,
    %c0_77 = arith.constant 0 : index
    %c0_78 = arith.constant 0 : index
    %297 = vector.load %arg16[%c0_77, %c0_78] : memref<32x32xf32, #tpu.memory_space<vmem>>, vector<32x32xf32>
    %c0_79 = arith.constant 0 : index
    %c0_80 = arith.constant 0 : index
    %298 = vector.load %arg10[%c0_79, %c0_80] : memref<32x128xf32, #tpu.memory_space<vmem>>, vector<32x128xf32>
    %cst_81 = arith.constant dense<0.000000e+00> : vector<32x128xf32>
    %299 = tpu.matmul %297, %298, %cst_81 {dimension_numbers = #tpu.dot_dimension_numbers<[1], [0], [0], [1], [0, 0, 1, 1], [], []>} : vector<32x32xf32>, vector<32x128xf32>, vector<32x128xf32> -> vector<32x128xf32>
    %c0_82 = arith.constant 0 : index
    %c0_83 = arith.constant 0 : index
    %300 = vector.load %arg11[%c0_82, %c0_83] : memref<1x128xf32, #tpu.memory_space<vmem>>, vector<1x128xf32>
    %301 = vector.broadcast %300 : vector<1x128xf32> to vector<32x128xf32>
    %302 = arith.addf %299, %301 : vector<32x128xf32>
    %c0_84 = arith.constant 0 : index
    %c0_85 = arith.constant 0 : index
    %303 = vector.load %arg2[%c0_84, %c0_85] : memref<32x32xf32, #tpu.memory_space<vmem>>, vector<32x32xf32>
    %c0_86 = arith.constant 0 : index
    %c0_87 = arith.constant 0 : index
    %304 = vector.load %arg12[%c0_86, %c0_87] : memref<32x128xf32, #tpu.memory_space<vmem>>, vector<32x128xf32>
    %cst_88 = arith.constant dense<0.000000e+00> : vector<32x128xf32>
    %305 = tpu.matmul %303, %304, %cst_88 {dimension_numbers = #tpu.dot_dimension_numbers<[1], [0], [0], [1], [0, 0, 1, 1], [], []>} : vector<32x32xf32>, vector<32x128xf32>, vector<32x128xf32> -> vector<32x128xf32>
    %c0_89 = arith.constant 0 : index
    %c0_90 = arith.constant 0 : index
    %306 = vector.load %arg13[%c0_89, %c0_90] : memref<1x128xf32, #tpu.memory_space<vmem>>, vector<1x128xf32>
    %307 = vector.broadcast %306 : vector<1x128xf32> to vector<32x128xf32>
    %308 = arith.addf %305, %307 : vector<32x128xf32>
    %cst_91 = arith.constant 0.000000e+00 : f32
    %309 = vector.broadcast %cst_91 : f32 to vector<32x128xf32>
    %310 = arith.maximumf %308, %309 : vector<32x128xf32>
    %311 = math.tanh %302 : vector<32x128xf32>
    %312 = tpu.iota {dimensions = array<i32: 1>} : vector<32x128xi32>
    %c48_i32 = arith.constant 48 : i32
    %313 = vector.broadcast %c48_i32 : i32 to vector<32x128xi32>
    %314 = arith.cmpi eq, %312, %313 : vector<32x128xi32>
    %cst_92 = arith.constant 5.000000e-01 : f32
    %315 = vector.broadcast %cst_92 : f32 to vector<32x128xf32>
    %316 = arith.mulf %315, %311 : vector<32x128xf32>
    %cst_93 = arith.constant 5.000000e-01 : f32
    %317 = vector.broadcast %cst_93 : f32 to vector<32x128xf32>
    %318 = arith.addf %316, %317 : vector<32x128xf32>
    %319 = arith.addf %311, %310 : vector<32x128xf32>
    %320 = arith.select %314, %318, %319 : vector<32x128xi1>, vector<32x128xf32>
    %c0_94 = arith.constant 0 : index
    %c0_95 = arith.constant 0 : index
    %321 = vector.load %arg14[%c0_94, %c0_95] : memref<32x128xf32, #tpu.memory_space<vmem>>, vector<32x128xf32>
    tpu.vector_store %arg14[%c0_94, %c0_95], %320 {strides = array<i32>} : memref<32x128xf32, #tpu.memory_space<vmem>>, vector<32x128xf32>,
    return
  }
  func.func @transform_0(%arg0: i32) -> (i32, i32) {
    %c0_i32 = arith.constant 0 : i32
    %c0_i32_0 = arith.constant 0 : i32
    return %arg0, %c0_i32 : i32, i32
  }
  func.func @transform_1(%arg0: i32) -> (i32, i32) {
    %c0_i32 = arith.constant 0 : i32
    %c0_i32_0 = arith.constant 0 : i32
    return %arg0, %c0_i32 : i32, i32
  }
  func.func @transform_2(%arg0: i32) -> (i32, i32) {
    %c0_i32 = arith.constant 0 : i32
    %c0_i32_0 = arith.constant 0 : i32
    %c0_i32_1 = arith.constant 0 : i32
    return %c0_i32, %c0_i32_0 : i32, i32
  }
  func.func @transform_3(%arg0: i32) -> (i32, i32) {
    %c0_i32 = arith.constant 0 : i32
    %c0_i32_0 = arith.constant 0 : i32
    %c0_i32_1 = arith.constant 0 : i32
    return %c0_i32, %c0_i32_0 : i32, i32
  }
  func.func @transform_4(%arg0: i32) -> (i32, i32) {
    %c0_i32 = arith.constant 0 : i32
    %c0_i32_0 = arith.constant 0 : i32
    %c0_i32_1 = arith.constant 0 : i32
    return %c0_i32, %c0_i32_0 : i32, i32
  }
  func.func @transform_5(%arg0: i32) -> (i32, i32) {
    %c0_i32 = arith.constant 0 : i32
    %c0_i32_0 = arith.constant 0 : i32
    %c0_i32_1 = arith.constant 0 : i32
    return %c0_i32, %c0_i32_0 : i32, i32
  }
  func.func @transform_6(%arg0: i32) -> (i32, i32) {
    %c0_i32 = arith.constant 0 : i32
    %c0_i32_0 = arith.constant 0 : i32
    %c0_i32_1 = arith.constant 0 : i32
    return %c0_i32, %c0_i32_0 : i32, i32
  }
  func.func @transform_7(%arg0: i32) -> (i32, i32) {
    %c0_i32 = arith.constant 0 : i32
    %c0_i32_0 = arith.constant 0 : i32
    %c0_i32_1 = arith.constant 0 : i32
    return %c0_i32, %c0_i32_0 : i32, i32
  }
  func.func @transform_8(%arg0: i32) -> (i32, i32) {
    %c0_i32 = arith.constant 0 : i32
    %c0_i32_0 = arith.constant 0 : i32
    %c0_i32_1 = arith.constant 0 : i32
    return %c0_i32, %c0_i32_0 : i32, i32
  }
  func.func @transform_9(%arg0: i32) -> (i32, i32) {
    %c0_i32 = arith.constant 0 : i32
    %c0_i32_0 = arith.constant 0 : i32
    %c0_i32_1 = arith.constant 0 : i32
    return %c0_i32, %c0_i32_0 : i32, i32
  }
  func.func @transform_10(%arg0: i32) -> (i32, i32) {
    %c0_i32 = arith.constant 0 : i32
    %c0_i32_0 = arith.constant 0 : i32
    %c0_i32_1 = arith.constant 0 : i32
    return %c0_i32, %c0_i32_0 : i32, i32
  }
  func.func @transform_11(%arg0: i32) -> (i32, i32) {
    %c0_i32 = arith.constant 0 : i32
    %c0_i32_0 = arith.constant 0 : i32
    %c0_i32_1 = arith.constant 0 : i32
    return %c0_i32, %c0_i32_0 : i32, i32
  }
  func.func @transform_12(%arg0: i32) -> (i32, i32) {
    %c0_i32 = arith.constant 0 : i32
    %c0_i32_0 = arith.constant 0 : i32
    %c0_i32_1 = arith.constant 0 : i32
    return %c0_i32, %c0_i32_0 : i32, i32
  }
  func.func @transform_13(%arg0: i32) -> (i32, i32) {
    %c0_i32 = arith.constant 0 : i32
    %c0_i32_0 = arith.constant 0 : i32
    return %arg0, %c0_i32 : i32, i32
  }
}

</mosaic_0001>

<bundles_post_ra>
// kernel: tpu_custom_call.1
= control target key start
LH: loop header
LB: loop body
LE: loop exit
PB: predicated region body
PF: predicated region fallthrough
CT: control target
= control target key end

     0   :  { %s3133_s0 = inlined_call_operand.vmem [shape: f32[64,32], index: 0, kind: input, shape index: {}]   ;;  %s3134_s1 = inlined_call_operand.vmem [shape: f32[64,32], index: 1, kind: input, shape index: {}]   ;;  %s3135_s2 = inlined_call_operand.vmem [shape: f32[32,96], index: 2, kind: input, shape index: {}]   ;;  %s3136_s3 = inlined_call_operand.vmem [shape: f32[1,96], index: 3, kind: input, shape index: {}]   ;;  %s3137_s4 = inlined_call_operand.vmem [shape: f32[32,192], index: 4, kind: input, shape index: {}]   ;;  %s3138_s5 = inlined_call_operand.vmem [shape: f32[32,96], index: 5, kind: input, shape index: {}]   ;;  %s3139_s6 = inlined_call_operand.vmem [shape: f32[1,96], index: 6, kind: input, shape index: {}]   ;;  %s3140_s7 = inlined_call_operand.hbm [shape: f32[1,32], index: 7, kind: input, shape index: {}]   ;;  %s3141_s8 = inlined_call_operand.hbm [shape: f32[1,32], index: 8, kind: input, shape index: {}]   ;;  %s3142_s9 = inlined_call_operand.vmem [shape: f32[32,128], index: 9, kind: input, shape index: {}]   ;;  %s3143_s10 = inlined_call_operand.vmem [shape: f32[1,128], index: 10, kind: input, shape index: {}]   ;;  %s3144_s11 = inlined_call_operand.vmem [shape: f32[32,128], index: 11, kind: input, shape index: {}]   ;;  %s3145_s12 = inlined_call_operand.vmem [shape: f32[1,128], index: 12, kind: input, shape index: {}]   ;;  %s3146_s13 = inlined_call_operand.hbm [shape: f32[64,128], index: 13, kind: output, shape index: {}]  }
   0x1   :  { %3156 = sst [smem:[#allocation20_spill]] %s3133_s0 }
   0x2   :  { %18 = vsyncpa [#allocation7], 0 }
   0x3   :  { %19 = vsyncpa [#allocation10], 0 }
   0x4   :  { %20 = vsyncpa [#allocation8], 0 }
   0x5   :  { %22 = vsyncpa [#allocation8 + $0x1], 0  ;;  %s2639_s25 = smov 0   ;;  %s2641_s26 = smov 0  }
   0x6   :  { %s2643_s27 = smov 0   ;;  %s2645_s28 = smov 0  }
   0x7 LB: > { %3157 = sst [smem:[#allocation15_spill]] %s2543_s25  ;;  %s2660_s29 = sadd.s32 4294967295, %s2555_s28   ;;  %s2555_s28 = sphi %s2645_s28, %s3178_s28   ;;  %s2551_s27 = sphi %s2643_s27, %s3180_s27   ;;  %s2547_s26 = sphi %s2641_s26, %s3182_s26   ;;  %s2543_s25 = sphi %s2639_s25, %s3181_s25  }
   0x8   : > { %3158 = sst [smem:[#allocation16_spill]] %s2551_s27  ;;  %s2011_s30 = sadd.s32 4294967294, %s2555_s28  }
   0x9   : > { %s2664_s14 = sadd.s32 1, %s2555_s28   ;;  %s318_s15 = sadd.s32 1, %s2551_s27 }
   0xa   : > { %3159 = sst [smem:[#allocation17_spill]] %s2664_s14  ;;  %s315_s16 = ssub.s32 %s2555_s28, %s2664_s14 }
   0xb   : > { %p328_p0 = scmp.ne.s32.totalorder %s2551_s27, %s2547_s26  ;;  %p316_p1 = scmp.eq.s32.totalorder %s315_s16, 0 }
   0xc   : > { %p329_p2 = scmp.eq.s32.totalorder %s2660_s29, 1  ;;  %p334_p3 = scmp.ne.s32.totalorder %s2547_s26, %s2543_s25 }
   0xd   : > { %p335_p4 = scmp.eq.s32.totalorder %s2011_s30, 1  ;;  %p2012_p7 = scmp.ge.s32.totalorder %s2555_s28, 1 }
   0xe   : > { %s2675_s17 = scalar_select %p316_p1, %s2551_s27, %s318_s15  }
   0xf   : > { %p2677_p5 = por %p329_p2, %p328_p0  ;;  %p2681_p6 = por %p335_p4, %p334_p3 }
  0x10   : > { %3160 = sst [smem:[#allocation18_spill]] %s2675_s17  ;;  %p342_p8 = scmp.lt.s32.totalorder %s2555_s28, 3 }
  0x11   : > { %s3161_s18 = scalar_select %p2677_p5, 1, 0 }
  0x12   : > { %s3162_s19 = scalar_select %p2681_p6, 1, 0 }
  0x13   : > { %p3151_p10 = scmp.eq.s32.totalorder %s2660_s29, 0  ;;  %p2689_p11 = pnand %p2012_p7, %p342_p8 }
  0x14   : > { %3163 = sst [smem:[#allocation19_spill]] %s3162_s19  ;;  %s2557_s21 = smov [#allocation6]  }
  0x15   : > { %s3164_s20 = scalar_select %p2689_p11, 1, 0 }
  0x16   : > { %s370_s22 = sshll.u32 %s2557_s21, 4  ;;  %p2298_p12 = pneg %p2689_p11  ;;  %s371_s22 = int_to_ptr.vmem [resolvable:$true] %s370_s22 }
  0x17   : > { %s2558_s23 = smov [#allocation9]   ;;  %s2429_s17 = scalar_lea.hbm %s3140_s7, 16 }
  0x18   : > { %s381_s24 = sshll.u32 %s2558_s23, 4  ;;  %p2697_p13 = pnand %p3151_p10, %p2298_p12  ;;  %s2701_s24 = int_to_ptr.vmem [resolvable:$true] %s381_s24 }
  0x19   : > { %p2430_p0 = scmp.ne.s32.totalorder %s3140_s7, %s2429_s17  ;;  %p2436_p4 = scmp.lt.u32.totalorder %s2429_s17, %s3140_s7 }
  0x1a   : > { %p2431_p1 = pneg %p2697_p13 }
  0x1c   : > { %p2432_p2 = pnand %p2431_p1, %p2430_p0 }
  0x1e   : > { %p2433_p3 = pneg %p2432_p2 }
  0x20   : > { %p2438_p7 = pnand %p2436_p4, %p2433_p3 }
  0x22   : > { %2441 = shalt.err (!%p2438_p7)
}
  0x23   : > { %s2442_s19 = scalar_lea.vmem %s371_s22, 16  ;;  %s2449_s27 = scalar_lea.vmem %s371_s22, 32 }
  0x24   : > { %p2443_p8 = scmp.ne.s32.totalorder %s371_s22, %s2442_s19  ;;  %p2450_p10 = scmp.lt.s32.totalorder %s371_s22, %s371_s22 }
  0x25   : > { %p2451_p6 = scmp.lt.s32.totalorder %s2449_s27, %s2442_s19 }
  0x26   : > { %p2445_p12 = pnand %p2443_p8, %p2431_p1 }
  0x27   : > { %p2452_p5 = por %p2451_p6, %p2450_p10 }
  0x28   : > { %p2446_p9 = pneg %p2445_p12 }
  0x2a   : > { %p2453_p11 = pnand %p2452_p5, %p2446_p9 }
  0x2c   : > { %2456 = shalt.err (!%p2453_p11)
}
  0x2d   : > { %2301 = dma.hbm_to_vmem [thread:$0]  (!%p2697_p13), %s3140_s7, 16, %s371_s22, [#allocation7]  }
  0x2e   : > { %s2457_s21 = scalar_lea.hbm %s3141_s8, 16 }
  0x2f   : > { %p2458_p0 = scmp.ne.s32.totalorder %s3141_s8, %s2457_s21  ;;  %p2464_p9 = scmp.lt.u32.totalorder %s2457_s21, %s3141_s8 }
  0x31   : > { %p2460_p6 = pnand %p2458_p0, %p2431_p1 }
  0x33   : > { %p2461_p5 = pneg %p2460_p6 }
  0x35   : > { %p2466_p10 = pnand %p2464_p9, %p2461_p5 }
  0x37   : > { %2469 = shalt.err (!%p2466_p10)
}
  0x38   : > { %s2470_s22 = scalar_lea.vmem %s2701_s24, 16  ;;  %s2477_s25 = scalar_lea.vmem %s2701_s24, 32 }
  0x39   : > { %p2471_p11 = scmp.ne.s32.totalorder %s2701_s24, %s2470_s22  ;;  %p2478_p4 = scmp.lt.s32.totalorder %s2701_s24, %s2701_s24 }
  0x3a   : > { %p2479_p7 = scmp.lt.s32.totalorder %s2477_s25, %s2470_s22 }
  0x3b   : > { %p2473_p2 = pnand %p2471_p11, %p2431_p1 }
  0x3c   : > { %p2480_p8 = por %p2479_p7, %p2478_p4 }
  0x3d   : > { %p2474_p3 = pneg %p2473_p2 }
  0x3f   : > { %p2481_p12 = pnand %p2480_p8, %p2474_p3 }
  0x41   : > { %2484 = shalt.err (!%p2481_p12)
}
  0x42   : > { %2304 = dma.hbm_to_vmem [thread:$0]  (!%p2697_p13), %s3141_s8, 16, %s2701_s24, [#allocation10]  }
  0x43   : > { %p3166_p0 = scmp.ne.s32.totalorder %s3164_s20, 0 }
  0x44   : > { %p3167_p1 = scmp.eq.s32.totalorder (!%p3166_p0), %s2660_s29, 0 }
  0x45   : > { %424 = sbr.rel (%p3166_p0) target bundleno = 3853 (0xf0d), region = 72 }
  0x4c   : > { %2530 = dma.done.wait (%p3167_p1), [#allocation7], 16   ;;  %p3168_p6 = pmov %p3167_p1 }
  0x4d   : > { %p3169_p5 = pmov %p3167_p1 }
  0x4e   : > { %2532 = vsyncadd (%p3168_p6), [#allocation7], 4294967280 }
  0x4f   : > { %2534 = dma.done.wait (%p3169_p5), [#allocation10], 16   ;;  %p3170_p9 = pmov %p3167_p1 }
  0x50   : > { %s3155_s30 = sand.u32 1, %s2547_s26   ;;  %s2020_s24 = sshll.u32 %s2660_s29, 2 }
  0x51   : > { %2536 = vsyncadd (%p3170_p9), [#allocation10], 4294967280  ;;  %s2019_s20 = sshll.u32 %s3155_s30, 5  ;;  %p478_p13 = scmp.lt.s32.totalorder %s2020_s24, 7 }
  0x52   : > { %s3171_s0 = sld [smem:[#allocation20_spill]]  ;;  %s2775_s25 = scalar_lea.vmem [#allocation11], %s2019_s20 }
  0x53   : > { %s3184_s24 = smov (!%p478_p13, %s2020_s24), 7  ;;  %p3172_p10 = scmp.ne.s32.totalorder %s2660_s29, 0 }
  0x54   : > { %s2021_s17 = sshll.u32 %s3184_s24, 3  ;;  %vm494_vm0 = vcmask (!%p3172_p10), 261120   ;;  %v2559_v0 = vmov (!%p3172_p10), 0.0  }
  0x55   : > { %s2773_s22 = scalar_lea.vmem %s3134_s1, %s2021_s17  ;;  %493 = sbr.rel (%p3172_p10) target bundleno = 92 (0x5c), region = 84  ;;  %495 = vst.msk [vmem:[#allocation4] sm:$0xff] (!%p3172_p10), %vm494_vm0, %v2559_v0  ;;  %496 = vst.msk [vmem:[#allocation5] sm:$0xff] (!%p3172_p10), %vm494_vm0, %v2559_v0 }
  0x58   : > { %s2768_s23 = scalar_lea.vmem %s3171_s0, %s2021_s17 }
  0x5c PF: > { %v501_v1 = vld [vmem:[%s3135_s2] sm:$0xff]  ;;  %v502_v2 = vld [vmem:[%s3135_s2 + $0x8] sm:$0xff]  ;;  %v618_v5 = vld [vmem:[%s3137_s4 + $0x18] sm:$0xff]  ;;  %v2560_v8 = vmov 0.0   ;;  %vm512_vm1 = vcmask 261120   ;;  %s2561_s24 = smov 64  }
  0x5d   : > { %v616_v3 = vld [vmem:[%s3137_s4 + $0x8] sm:$0xff]  ;;  %v2200_v4 = vpack.c.bf16 %v502_v2, %v501_v1  ;;  %v615_v6 = vld [vmem:[%s3137_s4] sm:$0xff]  ;;  %v617_v7 = vld [vmem:[%s3137_s4 + $0x10] sm:$0xff]  ;;  %714 = vmatprep.mubr.f32.mxu1 %v2560_v8  ;;  %vm610_vm2 = vcmask 785408   ;;  %s2562_s30 = smov 32   ;;  %s2563_s21 = smov 96  }
  0x5e   : > { %v2798_v9 = vpack.c.bf16 %v618_v5, %v616_v3  ;;  %v2800_v10 = vpack.c.bf16 %v617_v7, %v615_v6  ;;  %v503_v11 = vld [vmem:[%s3135_s2 + $0x10] sm:$0xff]  ;;  %v504_v12 = vld [vmem:[%s3135_s2 + $0x18] sm:$0xff]  ;;  %v620_v13 = vld [vmem:[%s3137_s4 + $0x28] sm:$0xff]  ;;  %v2564_v49 = vmov 0.0|0.0   ;;  %vm2565_vm3 = vmmov 0   ;;  %s2069_s16 = sshll.u32 %s2660_s29, 9 }
  0x5f   : > { %2201 = vmatprep.subr.bf16.mxu0 %v2200_v4  ;;  %v2204_v14 = vpack.c.bf16 %v504_v12, %v503_v11  ;;  %v622_v15 = vld [vmem:[%s3137_s4 + $0x38] sm:$0xff]  ;;  %v619_v16 = vld [vmem:[%s3137_s4 + $0x20] sm:$0xff]  ;;  %v621_v17 = vld [vmem:[%s3137_s4 + $0x30] sm:$0xff]  ;;  %s1915_s17 = sshll.u32 %s2775_s25, 4  ;;  %s3082_s20 = scalar_lea.hbm %s3146_s13, %s2069_s16  ;;  %s3084_s17 = int_to_ptr.vmem [resolvable:$true] %s1915_s17 }
  0x60   : > { %2209 = vmatprep.subr.bf16.mxu1 %v2798_v9  ;;  %2203 = vmatpush3.bf16.msra.mxu0 %v2200_v4  ;;  %v2821_v18 = vpack.c.bf16 %v622_v15, %v620_v13  ;;  %v497_v19 = vld [vmem:[%s2768_s23] sm:$0xff]  ;;  %v2825_v20 = vpack.c.bf16 %v621_v17, %v619_v16  ;;  %v2031_v21 = vld [vmem:[#allocation6] ss:$0 sm:$0xff]  ;;  %v498_v22 = vld [vmem:[%s2768_s23 + $0x8] sm:$0xff]  ;;  %s3173_s29 = sand.u32 1, %s2547_s26   ;;  %s2485_s27 = scalar_lea.vmem %s3084_s17, 512 }
  0x61   : > { %2211 = vmatpush1.bf16.msra.mxu1 %v2800_v10  ;;  %2205 = vmatprep.subr.bf16.mxu0 %v2204_v14  ;;  %v645_v23 = vld [vmem:[#allocation4] sm:$0xff]  ;;  %v499_v43 = vld [vmem:[%s2768_s23 + $0x10] sm:$0xff]  ;;  %v500_v44 = vld [vmem:[%s2768_s23 + $0x18] sm:$0xff]  ;;  %s3092_s19 = scalar_lea.sflag [#allocation8], %s3173_s29  ;;  %p2486_p11 = scmp.ne.s32.totalorder %s3084_s17, %s2485_s27 }
  0x62   : > { %2213 = vmatprep.subr.bf16.mxu1 %v2821_v18  ;;  %2122 = vmatprep.mubr.msk.f32.mxu0 %vm512_vm1, %v497_v19  ;;  %v2844_v25 = vld [vmem:[%s3136_s3] ss:$0 sm:$0xff]  ;;  %v624_v47 = vld [vmem:[%s3138_s5 + $0x8] sm:$0xff]  ;;  %v625_v50 = vld [vmem:[%s3138_s5 + $0x10] sm:$0xff]  ;;  %p3174_p2 = scmp.ne.s32.totalorder %s3161_s18, 0  ;;  %s2566_s23 = smov [#allocation11]  }
  0x63   : > { %728 = vrot.lane.b32.xlu0 %v2031_v21, %s2561_s24  ;;  %v623_v46 = vld [vmem:[%s3138_s5] sm:$0xff]  ;;  %v626_v51 = vld [vmem:[%s3138_s5 + $0x18] sm:$0xff]  ;;  %v2882_v53 = vld [vmem:[#allocation5] sm:$0xff]  ;;  %s2489_s15 = sshll.u32 %s2566_s23, 4  ;;  %s2490_s15 = int_to_ptr.vmem [resolvable:$false] %s2489_s15 }
  0x64   : > { %2207 = vmatpush3.bf16.msra.mxu0 %v2204_v14  ;;  %v2866_v48 = vpack.c.bf16 %v624_v47, %v623_v46  ;;  %v2876_v52 = vpack.c.bf16 %v626_v51, %v625_v50  ;;  %v2032_v60 = vld [vmem:[#allocation9] ss:$0 sm:$0xff]  ;;  %v2030_v12 = vld [vmem:[%s3139_s6] ss:$0 sm:$0xff]  ;;  %p2487_p3 = pnand %p2486_p11, %p3174_p2  ;;  %p2492_p7 = scmp.lt.s32.totalorder %s3084_s17, %s2490_s15 }
  0x65   : > { %2215 = vmatpush1.bf16.msra.mxu1 %v2825_v20  ;;  %2217 = vmatprep.subr.bf16.mxu0 %v2798_v9 }
  0x66   : > { %2224 = vmatprep.subr.bf16.mxu1 %v2564_v49  ;;  %p2488_p4 = pneg %p2487_p3 }
  0x67   : > { %2123 = vmatmul.mubr.msk.f32.vlgmr.msra.gmra.mrb[0].mxu0 %vm512_vm1, %v498_v22 }
  0x68   : > { %2033 = vmatmul.mubr.msk.f32.vlgmr.msra.gmra.mrb[0].mxu1 %vm512_vm1, %v645_v23  ;;  %2219 = vmatpush1.bf16.msra.mxu0 %v2800_v10 }
  0x69   : > { %2221 = vmatprep.subr.bf16.mxu0 %v2821_v18  ;;  %2125 = vmatprep.mubr.msk.f32.mxu0 %vm512_vm1, %v499_v43 }
  0x6a   : > { %2226 = vmatpush3.bf16.msra.mxu1 %v2866_v48  ;;  %2136 = vmatprep.mubr.msk.f32.mxu1 %vm2565_vm3, %v2560_v8 }
  0x6b   : > { %2126 = vmatmul.mubr.msk.f32.gmra.mrb[2].mxu0 %vm512_vm1, %v500_v44  ;;  %2227 = vmatprep.subr.bf16.mxu1 %v2564_v49 }
  0x6c   : > { %2223 = vmatpush1.bf16.msra.mxu0 %v2825_v20  ;;  %823 = vmatprep.mubr.f32.mxu0 %v2560_v8 }
  0x6d   : > { %2231 = vmatprep.subr.bf16.mxu0 %v2798_v9 }
  0x6e   : > { %2229 = vmatpush3.bf16.msra.mxu1 %v2876_v52 }
  0x6f   : > { %2238 = vmatprep.subr.bf16.mxu1 %v2564_v49 }
  0x71   : > { %2137 = vmatmul.mubr.msk.f32.vlgmr.msra.gmra.mrb[2].mxu1 %vm512_vm1, %v2882_v53 }
  0x72   : > { %2240 = vmatpush3.bf16.msra.mxu1 %v2866_v48  ;;  %2147 = vmatprep.mubr.msk.f32.mxu1 %vm2565_vm3, %v2560_v8 }
  0x73   : > { %2241 = vmatprep.subr.bf16.mxu1 %v2564_v49 }
  0x76   : > { %2243 = vmatpush3.bf16.msra.mxu1 %v2876_v52 }
  0x77   : > { %2252 = vmatprep.subr.bf16.mxu1 %v2564_v49 }
  0xd5   : > { %v2839_v24 = vpop.permute.xlu0 %728 }
 0x13a   : > { %v2124_v26 = vpop.f32.mrb[0].mxu0 }
 0x13b   : > { %v597_v27 = vadd.f32 %v2124_v26, %v2844_v25  ;;  %v716_v28 = vpop.f32.mrb[0].mxu1  ;;  %v591_v29 = vpop.f32.mrb[1].mxu0 }
 0x13c   : > { %v731_v30 = vadd.f32 %v2839_v24, %v716_v28  ;;  %v592_v31 = vadd.f32 %v2844_v25, %v591_v29  ;;  %v718_v32 = vpop.f32.mrb[1].mxu1 }
 0x13d   : > { %612 = vst.msk [vmem:[#allocation2 + $0x8] sm:$0xff] %vm610_vm2, %v597_v27 }
 0x13e   : > { %611 = vst.msk [vmem:[#allocation2] sm:$0xff] %vm610_vm2, %v592_v31  ;;  %733 = vrot.lane.b32.xlu0 %v731_v30, %s2561_s24  ;;  %v2127_v61 = vpop.f32.mrb[2].mxu0 }
 0x13f   : > { %v607_v62 = vadd.f32 %v2127_v61, %v2844_v25  ;;  %v601_v63 = vpop.f32.mrb[3].mxu0 }
 0x140   : > { %v602_v0 = vadd.f32 %v2844_v25, %v601_v63 }
 0x141   : > { %614 = vst.msk [vmem:[#allocation2 + $0x18] sm:$0xff] %vm610_vm2, %v607_v62 }
 0x142   : > { %749 = vrot.lane.b32.xlu0 %v645_v23, %s2562_s30  ;;  %613 = vst.msk [vmem:[#allocation2 + $0x10] sm:$0xff] %vm610_vm2, %v602_v0 }
 0x144   : > { %v899_v2 = vpop.f32.mrb[2].mxu1  ;;  %v904_v13 = vld [vmem:[#allocation2 + $0x8] sm:$0xff] }
 0x145   : > { %v720_v33 = vld [vmem:[#allocation2] sm:$0xff]  ;;  %v2138_v3 = vpop.f32.mrb[3].mxu1 }
 0x146   : > { %v721_v34 = vadd.f32 %v720_v33, %v716_v28 }
 0x148   : > { %v2034_v35 = vmul.f32 -1.442695, %v721_v34 }
 0x149   : > { %v1137_v3 = vld [vmem:[#allocation2 + $0x10] sm:$0xff] }
 0x14a   : > { %2357 = vpow2.f32 %v2034_v35 }
 0x154   : > { %v2358_v36 = vpop.eup %2357 }
 0x155   : > { %v725_v37 = vadd.f32 1.0, %v2358_v36 }
 0x157   : > { %2359 = vrcp.f32 %v725_v37 }
 0x161   : > { %v2360_v38 = vpop.eup %2359 }
 0x162   : > { %v743_v55 = vsub.f32 1.0, %v2360_v38 }
 0x1b0   : > { %v734_v39 = vpop.permute.xlu0 %733 }
 0x1b1   : > { %v736_v40 = vmul.f32 %v2360_v38, %v734_v39 }
 0x1b3   : > { %738 = vrot.lane.b32.xlu1 %v736_v40, %s2561_s24 }
 0x1b4   : > { %v750_v54 = vpop.permute.xlu0 %749 }
 0x1b5   : > { %v752_v57 = vmul.f32 %v2360_v38, %v750_v54 }
 0x225   : > { %v739_v41 = vpop.permute.xlu1 %738 }
 0x226   : > { %v741_v42 = vadd.f32 %v739_v41, %v720_v33 }
 0x228   : > { %2361 = vtanh.f32 %v741_v42 }
 0x232   : > { %v2362_v45 = vpop.eup %2361 }
 0x233   : > { %745 = vrot.lane.b32.xlu1 %v2362_v45, %s2563_s21 }
 0x2a5   : > { %v746_v56 = vpop.permute.xlu1 %745 }
 0x2a6   : > { %v748_v58 = vmul.f32 %v746_v56, %v743_v55 }
 0x2a8   : > { %v2891_v59 = vadd.f32 %v752_v57, %v748_v58 }
 0x2aa   : > { %755 = vrot.lane.b32.xlu1 %v2891_v59, %s2563_s21 }
 0x2ae   : > { %955 = vrot.lane.b32.xlu1 %v2032_v60, %s2561_s24 }
 0x2b2   : > { %938 = vrot.lane.b32.xlu1 %v899_v2, %s2563_s21 }
 0x31c   : > { %v756_v1 = vpop.permute.xlu1 %755 }
 0x31d   : > { %2035 = vmatmul.mubr.msk.f32.vlgmr.msra.gmra.mrb[4].mxu0 %vm512_vm1, %v756_v1 }
 0x31e   : > { %2233 = vmatpush1.bf16.msra.mxu0 %v2800_v10  ;;  %1057 = vmatprep.mubr.f32.mxu0 %v2560_v8 }
 0x31f   : > { %2235 = vmatprep.subr.bf16.mxu0 %v2821_v18 }
 0x320   : > { %v2909_v4 = vpop.permute.xlu1 %955 }
 0x321   : > { %v958_v5 = vadd.f32 %v2909_v4, %v899_v2 }
 0x322   : > { %2237 = vmatpush1.bf16.msra.mxu0 %v2825_v20 }
 0x323   : > { %2245 = vmatprep.subr.bf16.mxu0 %v2798_v9  ;;  %960 = vrot.lane.b32.xlu1 %v958_v5, %s2562_s30 }
 0x324   : > { %v939_v25 = vpop.permute.xlu1 %938 }
 0x395   : > { %v961_v31 = vpop.permute.xlu1 %960 }
 0x3f0   : > { %v825_v6 = vpop.f32.mrb[4].mxu0 }
 0x3f1   : > { %v912_v7 = vadd.f32 %v825_v6, %v2839_v24  ;;  %v827_v11 = vpop.f32.mrb[5].mxu0  ;;  %v905_v14 = vadd.f32 %v904_v13, %v825_v6 }
 0x3f3   : > { %914 = vrot.lane.b32.xlu0 %v912_v7, %s2561_s24  ;;  %v2037_v15 = vmul.f32 -1.442695, %v905_v14 }
 0x3f5   : > { %2363 = vpow2.f32 %v2037_v15 }
 0x3f7   : > { %932 = vrot.lane.b32.xlu0 %v2030_v12, %s2563_s21 }
 0x3ff   : > { %v2364_v16 = vpop.eup %2363 }
 0x400   : > { %v909_v17 = vadd.f32 1.0, %v2364_v16 }
 0x402   : > { %2365 = vrcp.f32 %v909_v17 }
 0x40c   : > { %v2366_v19 = vpop.eup %2365 }
 0x40d   : > { %v924_v43 = vsub.f32 1.0, %v2366_v19  ;;  %v930_v45 = vmul.f32 %v2366_v19, %v2891_v59 }
 0x465   : > { %v915_v21 = vpop.permute.xlu0 %914 }
 0x466   : > { %v917_v22 = vmul.f32 %v2366_v19, %v915_v21 }
 0x468   : > { %919 = vrot.lane.b32.xlu0 %v917_v22, %s2561_s24 }
 0x469   : > { %v2920_v23 = vpop.permute.xlu0 %932 }
 0x46a   : > { %v935_v26 = vadd.f32 %v2920_v23, %v825_v6  ;;  %v936_v37 = vadd.f32 %v2920_v23, %v827_v11 }
 0x46c   : > { %v941_v27 = vadd.f32 %v939_v25, %v935_v26  ;;  %v948_v41 = vadd.f32 %v939_v25, %v936_v37 }
 0x46e   : > { %v2038_v28 = vmul.f32 -1.442695, %v941_v27  ;;  %v2039_v42 = vmul.f32 -1.442695, %v948_v41 }
 0x470   : > { %2367 = vpow2.f32 %v2038_v28 }
 0x47a   : > { %v2368_v29 = vpop.eup %2367 }
 0x47b   : > { %v945_v30 = vadd.f32 1.0, %v2368_v29 }
 0x47d   : > { %2369 = vrcp.f32 %v945_v30 }
 0x487   : > { %v2370_v32 = vpop.eup %2369 }
 0x488   : > { %v963_v33 = vmul.f32 %v2370_v32, %v961_v31 }
 0x48a   : > { %965 = vrot.lane.b32.xlu0 %v963_v33, %s2561_s24 }
 0x4da   : > { %v920_v34 = vpop.permute.xlu0 %919 }
 0x4db   : > { %v922_v35 = vadd.f32 %v920_v34, %v904_v13 }
 0x4dd   : > { %2371 = vtanh.f32 %v922_v35 }
 0x4e7   : > { %v2372_v36 = vpop.eup %2371 }
 0x4e8   : > { %926 = vrot.lane.b32.xlu1 %v2372_v36, %s2563_s21 }
 0x4fc   : > { %v966_v38 = vpop.permute.xlu0 %965 }
 0x4fd   : > { %v968_v39 = vadd.f32 %v966_v38, %v936_v37 }
 0x4ff   : > { %2373 = vtanh.f32 %v968_v39 }
 0x500   : > { %2375 = vpow2.f32 %v2039_v42 }
 0x509   : > { %v2374_v40 = vpop.eup %2373 }
 0x50a   : > { %972 = vrot.lane.b32.xlu1 %v2374_v40, %s2563_s21  ;;  %v2376_v50 = vpop.eup %2375 }
 0x50b   : > { %v952_v51 = vadd.f32 1.0, %v2376_v50 }
 0x50d   : > { %2377 = vrcp.f32 %v952_v51 }
 0x517   : > { %v2378_v54 = vpop.eup %2377 }
 0x518   : > { %v970_v55 = vsub.f32 1.0, %v2378_v54  ;;  %v976_v57 = vmul.f32 %v2378_v54, %v2882_v53 }
 0x55a   : > { %v927_v44 = vpop.permute.xlu1 %926 }
 0x55b   : > { %v929_v46 = vmul.f32 %v927_v44, %v924_v43 }
 0x55d   : > { %v2928_v47 = vadd.f32 %v930_v45, %v929_v46 }
 0x55f   : > { %989 = vrot.lane.b32.xlu0 %v2928_v47, %s2563_s21 }
 0x57c   : > { %v973_v56 = vpop.permute.xlu1 %972 }
 0x57d   : > { %v975_v58 = vmul.f32 %v973_v56, %v970_v55 }
 0x57f   : > { %v2933_v60 = vadd.f32 %v976_v57, %v975_v58 }
 0x581   : > { %2148 = vmatmul.mubr.msk.f32.vlgmr.msra.gmra.mrb[4].mxu1 %vm512_vm1, %v2933_v60 }
 0x582   : > { %2254 = vmatpush3.bf16.msra.mxu1 %v2866_v48  ;;  %2158 = vmatprep.mubr.msk.f32.mxu1 %vm2565_vm3, %v2560_v8 }
 0x583   : > { %2255 = vmatprep.subr.bf16.mxu1 %v2564_v49 }
 0x586   : > { %2257 = vmatpush3.bf16.msra.mxu1 %v2876_v52 }
 0x587   : > { %2266 = vmatprep.subr.bf16.mxu1 %v2564_v49 }
 0x5d1   : > { %v990_v61 = vpop.permute.xlu0 %989 }
 0x5d2   : > { %2040 = vmatmul.mubr.msk.f32.vlgmr.msra.gmra.mrb[6].mxu0 %vm512_vm1, %v990_v61 }
 0x5d3   : > { %2247 = vmatpush1.bf16.msra.mxu0 %v2800_v10  ;;  %1285 = vmatprep.mubr.f32.mxu0 %v2560_v8 }
 0x5d4   : > { %2249 = vmatprep.subr.bf16.mxu0 %v2821_v18 }
 0x5d7   : > { %2251 = vmatpush1.bf16.msra.mxu0 %v2825_v20 }
 0x5d8   : > { %2259 = vmatprep.subr.bf16.mxu0 %v2798_v9 }
 0x654   : > { %v1132_v53 = vpop.f32.mrb[4].mxu1 }
 0x655   : > { %1168 = vrot.lane.b32.xlu1 %v1132_v53, %s2563_s21  ;;  %v2149_v62 = vpop.f32.mrb[5].mxu1  ;;  %v1185_v2 = vadd.f32 %v1132_v53, %v2909_v4 }
 0x6a5   : > { %v1059_v63 = vpop.f32.mrb[6].mxu0 }
 0x6a6   : > { %v1145_v0 = vadd.f32 %v1059_v63, %v2839_v24  ;;  %v1061_v1 = vpop.f32.mrb[7].mxu0  ;;  %v1138_v5 = vadd.f32 %v1137_v3, %v1059_v63  ;;  %v1165_v7 = vadd.f32 %v1059_v63, %v2920_v23 }
 0x6a7   : > { %v1166_v29 = vadd.f32 %v1061_v1, %v2920_v23 }
 0x6a8   : > { %1147 = vrot.lane.b32.xlu0 %v1145_v0, %s2561_s24  ;;  %v2042_v9 = vmul.f32 -1.442695, %v1138_v5  ;;  %v1365_v0 = vld [vmem:[#allocation2 + $0x18] sm:$0xff] }
 0x6aa   : > { %2379 = vpow2.f32 %v2042_v9 }
 0x6ac   : > { %1187 = vrot.lane.b32.xlu0 %v1185_v2, %s2562_s30 }
 0x6b4   : > { %v2380_v13 = vpop.eup %2379 }
 0x6b5   : > { %v1142_v14 = vadd.f32 1.0, %v2380_v13 }
 0x6c7   : > { %v1169_v6 = vpop.permute.xlu1 %1168 }
 0x6c8   : > { %v1171_v11 = vadd.f32 %v1169_v6, %v1165_v7  ;;  %v1178_v34 = vadd.f32 %v1169_v6, %v1166_v29 }
 0x6ca   : > { %v2043_v12 = vmul.f32 -1.442695, %v1171_v11  ;;  %v2044_v35 = vmul.f32 -1.442695, %v1178_v34 }
 0x6cc   : > { %2381 = vpow2.f32 %v2043_v12 }
 0x6cd   : > { %2383 = vrcp.f32 %v1142_v14 }
 0x6d6   : > { %v2382_v15 = vpop.eup %2381 }
 0x6d7   : > { %v1175_v16 = vadd.f32 1.0, %v2382_v15  ;;  %v2384_v17 = vpop.eup %2383 }
 0x6d8   : > { %v1157_v38 = vsub.f32 1.0, %v2384_v17  ;;  %v1163_v41 = vmul.f32 %v2384_v17, %v2928_v47 }
 0x6d9   : > { %2385 = vrcp.f32 %v1175_v16 }
 0x6e3   : > { %v2386_v22 = vpop.eup %2385 }
 0x71a   : > { %v1148_v19 = vpop.permute.xlu0 %1147 }
 0x71b   : > { %v1150_v21 = vmul.f32 %v2384_v17, %v1148_v19 }
 0x71d   : > { %1152 = vrot.lane.b32.xlu1 %v1150_v21, %s2561_s24 }
 0x71e   : > { %v1188_v25 = vpop.permute.xlu0 %1187 }
 0x71f   : > { %v1190_v26 = vmul.f32 %v2386_v22, %v1188_v25 }
 0x721   : > { %1192 = vrot.lane.b32.xlu0 %v1190_v26, %s2561_s24 }
 0x78f   : > { %v1153_v27 = vpop.permute.xlu1 %1152 }
 0x790   : > { %v1155_v28 = vadd.f32 %v1153_v27, %v1137_v3 }
 0x792   : > { %2387 = vtanh.f32 %v1155_v28 }
 0x793   : > { %v1193_v30 = vpop.permute.xlu0 %1192 }
 0x794   : > { %v1195_v31 = vadd.f32 %v1193_v30, %v1166_v29 }
 0x796   : > { %2389 = vtanh.f32 %v1195_v31 }
 0x797   : > { %2391 = vpow2.f32 %v2044_v35 }
 0x79c   : > { %v2388_v32 = vpop.eup %2387 }
 0x79d   : > { %1159 = vrot.lane.b32.xlu1 %v2388_v32, %s2563_s21 }
 0x7a0   : > { %v2390_v33 = vpop.eup %2389 }
 0x7a1   : > { %1199 = vrot.lane.b32.xlu0 %v2390_v33, %s2563_s21  ;;  %v2392_v36 = vpop.eup %2391 }
 0x7a2   : > { %v1182_v37 = vadd.f32 1.0, %v2392_v36 }
 0x7a4   : > { %2393 = vrcp.f32 %v1182_v37 }
 0x7ae   : > { %v2394_v39 = vpop.eup %2393 }
 0x7af   : > { %v1197_v44 = vsub.f32 1.0, %v2394_v39  ;;  %v1203_v46 = vmul.f32 %v2394_v39, %v2933_v60 }
 0x80f   : > { %v1160_v40 = vpop.permute.xlu1 %1159 }
 0x810   : > { %v1162_v42 = vmul.f32 %v1160_v40, %v1157_v38 }
 0x812   : > { %v2961_v43 = vadd.f32 %v1163_v41, %v1162_v42 }
 0x813   : > { %v1200_v45 = vpop.permute.xlu0 %1199 }
 0x814   : > { %v1202_v50 = vmul.f32 %v1200_v45, %v1197_v44  ;;  %1217 = vrot.lane.b32.xlu1 %v2961_v43, %s2563_s21 }
 0x816   : > { %v2966_v51 = vadd.f32 %v1203_v46, %v1202_v50 }
 0x818   : > { %2159 = vmatmul.mubr.msk.f32.vlgmr.msra.gmra.mrb[6].mxu1 %vm512_vm1, %v2966_v51 }
 0x819   : > { %2268 = vmatpush3.bf16.msra.mxu1 %v2866_v48  ;;  %2169 = vmatprep.mubr.msk.f32.mxu1 %vm2565_vm3, %v2560_v8 }
 0x81a   : > { %2269 = vmatprep.subr.bf16.mxu1 %v2564_v49 }
 0x81d   : > { %2271 = vmatpush3.bf16.msra.mxu1 %v2876_v52 }
 0x886   : > { %v1218_v54 = vpop.permute.xlu1 %1217 }
 0x887   : > { %2045 = vmatmul.mubr.msk.f32.vlgmr.msra.gmra.mrb[8].mxu0 %vm512_vm1, %v1218_v54 }
 0x888   : > { %2261 = vmatpush1.bf16.msra.mxu0 %v2800_v10  ;;  %1513 = vmatprep.mubr.f32.mxu0 %v2560_v8 }
 0x889   : > { %2263 = vmatprep.subr.bf16.mxu0 %v2821_v18 }
 0x88c   : > { %2265 = vmatpush1.bf16.msra.mxu0 %v2825_v20 }
 0x8eb   : > { %v1360_v55 = vpop.f32.mrb[6].mxu1 }
 0x8ec   : > { %1396 = vrot.lane.b32.xlu0 %v1360_v55, %s2563_s21  ;;  %v2160_v48 = vpop.f32.mrb[7].mxu1  ;;  %v1413_v56 = vadd.f32 %v1360_v55, %v2909_v4 }
 0x8f0   : > { %1415 = vrot.lane.b32.xlu0 %v1413_v56, %s2562_s30 }
 0x95a   : > { %v1287_v49 = vpop.f32.mrb[8].mxu0 }
 0x95b   : > { %v1373_v52 = vadd.f32 %v1287_v49, %v2839_v24  ;;  %v1289_v57 = vpop.f32.mrb[9].mxu0  ;;  %v1393_v10 = vadd.f32 %v1287_v49, %v2920_v23  ;;  %v1366_v1 = vadd.f32 %v1365_v0, %v1287_v49 }
 0x95c   : > { %v1394_v9 = vadd.f32 %v1289_v57, %v2920_v23 }
 0x95d   : > { %1375 = vrot.lane.b32.xlu1 %v1373_v52, %s2561_s24  ;;  %v2047_v24 = vmul.f32 -1.442695, %v1366_v1 }
 0x95e   : > { %v1397_v8 = vpop.permute.xlu0 %1396 }
 0x95f   : > { %v1399_v18 = vadd.f32 %v1397_v8, %v1393_v10  ;;  %v1406_v16 = vadd.f32 %v1397_v8, %v1394_v9 }
 0x961   : > { %v2048_v58 = vmul.f32 -1.442695, %v1399_v18  ;;  %v2049_v17 = vmul.f32 -1.442695, %v1406_v16  ;;  %v1765_v16 = vld [vmem:[%s3144_s11 + $0x18] sm:$0xff] }
 0x962   : > { %v1416_v62 = vpop.permute.xlu0 %1415 }
 0x963   : > { %2395 = vpow2.f32 %v2048_v58 }
 0x96d   : > { %v2396_v20 = vpop.eup %2395 }
 0x96e   : > { %v1403_v61 = vadd.f32 1.0, %v2396_v20 }
 0x970   : > { %2397 = vrcp.f32 %v1403_v61 }
 0x971   : > { %2399 = vpow2.f32 %v2047_v24 }
 0x97a   : > { %v2398_v53 = vpop.eup %2397 }
 0x97b   : > { %v1418_v63 = vmul.f32 %v2398_v53, %v1416_v62  ;;  %v2400_v2 = vpop.eup %2399  ;;  %v1651_v53 = vld [vmem:[%s3142_s9 + $0x8] sm:$0xff] }
 0x97c   : > { %v1370_v3 = vadd.f32 1.0, %v2400_v2 }
 0x97d   : > { %1420 = vrot.lane.b32.xlu0 %v1418_v63, %s2561_s24 }
 0x97e   : > { %2401 = vrcp.f32 %v1370_v3 }
 0x988   : > { %v2402_v5 = vpop.eup %2401 }
 0x989   : > { %v1385_v31 = vsub.f32 1.0, %v2402_v5  ;;  %v1391_v33 = vmul.f32 %v2402_v5, %v2961_v43 }
 0x9cf   : > { %v1376_v6 = vpop.permute.xlu1 %1375 }
 0x9d0   : > { %v1378_v7 = vmul.f32 %v2402_v5, %v1376_v6 }
 0x9d2   : > { %1380 = vrot.lane.b32.xlu1 %v1378_v7, %s2561_s24 }
 0x9ef   : > { %v1421_v11 = vpop.permute.xlu0 %1420 }
 0x9f0   : > { %v1423_v12 = vadd.f32 %v1421_v11, %v1394_v9  ;;  %v1762_v11 = vld [vmem:[%s3144_s11] sm:$0xff] }
 0x9f2   : > { %2403 = vtanh.f32 %v1423_v12  ;;  %v1763_v12 = vld [vmem:[%s3144_s11 + $0x8] sm:$0xff] }
 0x9fc   : > { %v2404_v13 = vpop.eup %2403 }
 0x9fd   : > { %1427 = vrot.lane.b32.xlu0 %v2404_v13, %s2563_s21 }
 0xa44   : > { %v1381_v14 = vpop.permute.xlu1 %1380 }
 0xa45   : > { %v1383_v15 = vadd.f32 %v1381_v14, %v1365_v0  ;;  %v1653_v0 = vld [vmem:[%s3142_s9 + $0x18] sm:$0xff]  ;;  %v2280_v14 = vpack.c.bf16 %v1763_v12, %v1762_v11 }
 0xa47   : > { %2405 = vtanh.f32 %v1383_v15  ;;  %v1764_v15 = vld [vmem:[%s3144_s11 + $0x10] sm:$0xff]  ;;  %2281 = vmatprep.subr.bf16.mxu1 %v2280_v14 }
 0xa48   : > { %2407 = vpow2.f32 %v2049_v17  ;;  %v2284_v17 = vpack.c.bf16 %v1765_v16, %v1764_v15 }
 0xa51   : > { %v2406_v19 = vpop.eup %2405 }
 0xa52   : > { %1387 = vrot.lane.b32.xlu1 %v2406_v19, %s2563_s21  ;;  %v2408_v21 = vpop.eup %2407  ;;  %v1758_v19 = vld [vmem:[%s2773_s22] sm:$0xff] }
 0xa53   : > { %v1410_v22 = vadd.f32 1.0, %v2408_v21 }
 0xa55   : > { %2409 = vrcp.f32 %v1410_v22  ;;  %v1759_v22 = vld [vmem:[%s2773_s22 + $0x8] sm:$0xff] }
 0xa5f   : > { %v2410_v25 = vpop.eup %2409 }
 0xa60   : > { %v1425_v26 = vsub.f32 1.0, %v2410_v25  ;;  %v1431_v28 = vmul.f32 %v2410_v25, %v2966_v51  ;;  %v1760_v25 = vld [vmem:[%s2773_s22 + $0x10] sm:$0xff] }
 0xa6f   : > { %v1428_v27 = vpop.permute.xlu0 %1427 }
 0xa70   : > { %v1430_v29 = vmul.f32 %v1428_v27, %v1425_v26  ;;  %v1761_v26 = vld [vmem:[%s2773_s22 + $0x18] sm:$0xff]  ;;  %s2491_s22 = scalar_lea.vmem %s2490_s15, 1024 }
 0xa71   : > { %p2493_p8 = scmp.lt.s32.totalorder %s2491_s22, %s2485_s27 }
 0xa72   : > { %v2992_v30 = vadd.f32 %v1431_v28, %v1430_v29 }
 0xa73   : > { %p2494_p12 = por %p2493_p8, %p2492_p7 }
 0xa74   : > { %2170 = vmatmul.mubr.msk.f32.vlgmr.msra.gmra.mrb[8].mxu1 %vm512_vm1, %v2992_v30 }
 0xa75   : > { %2283 = vmatpush3.bf16.msra.mxu1 %v2280_v14  ;;  %2194 = vmatprep.mubr.msk.f32.mxu1 %vm512_vm1, %v1758_v19  ;;  %p2495_p0 = pnand %p2494_p12, %p2488_p4 }
 0xa76   : > { %2285 = vmatprep.subr.bf16.mxu1 %v2284_v17 }
 0xa79   : > { %2287 = vmatpush3.bf16.msra.mxu1 %v2284_v17 }
 0xa7c   : > { %2195 = vmatmul.mubr.msk.f32.vlgmr.msra.gmra.mrb[10].mxu1 %vm512_vm1, %v1759_v22 }
 0xa7d   : > { %2197 = vmatprep.mubr.msk.f32.mxu1 %vm512_vm1, %v1760_v25 }
 0xa80   : > { %2198 = vmatmul.mubr.msk.f32.gmra.mrb[12].mxu1 %vm512_vm1, %v1761_v26 }
 0xac4   : > { %v1388_v32 = vpop.permute.xlu1 %1387 }
 0xac5   : > { %v1390_v34 = vmul.f32 %v1388_v32, %v1385_v31 }
 0xac7   : > { %v2997_v35 = vadd.f32 %v1391_v33, %v1390_v34 }
 0xac9   : > { %1445 = vrot.lane.b32.xlu1 %v2997_v35, %s2563_s21 }
 0xb3b   : > { %v1446_v36 = vpop.permute.xlu1 %1445 }
 0xb3c   : > { %1644 = vst.msk [vmem:[#allocation4] sm:$0xff] %vm512_vm1, %v1446_v36  ;;  %2050 = vmatmul.mubr.msk.f32.vlgmr.msra.gmra.mrb[10].mxu0 %vm512_vm1, %v1446_v36 }
 0xb47   : > { %v1588_v37 = vpop.f32.mrb[8].mxu1 }
 0xb48   : > { %v1612_v38 = vadd.f32 %v1588_v37, %v2909_v4  ;;  %1595 = vrot.lane.b32.xlu0 %v1588_v37, %s2563_s21  ;;  %v2171_v39 = vpop.f32.mrb[9].mxu1  ;;  %v2054_v37 = vld [vmem:[%s3143_s10] ss:$0 sm:$0xff] }
 0xb4a   : > { %1614 = vrot.lane.b32.xlu1 %v1612_v38, %s2562_s30 }
 0xb4f   : > { %v2196_v31 = vpop.f32.mrb[10].mxu1 }
 0xb50   : > { %v1851_v32 = vpop.f32.mrb[11].mxu1 }
 0xbba   : > { %v1596_v44 = vpop.permute.xlu0 %1595 }
 0xbbc   : > { %v1615_v48 = vpop.permute.xlu1 %1614 }
 0xc0f   : > { %v1515_v40 = vpop.f32.mrb[10].mxu0 }
 0xc10   : > { %v1592_v41 = vadd.f32 %v1515_v40, %v2920_v23  ;;  %v1517_v42 = vpop.f32.mrb[11].mxu0 }
 0xc11   : > { %v1593_v4 = vadd.f32 %v1517_v42, %v2920_v23  ;;  %v2059_v42 = vld [vmem:[%s3145_s12] ss:$0 sm:$0xff] }
 0xc12   : > { %v1598_v45 = vadd.f32 %v1596_v44, %v1592_v41 }
 0xc13   : > { %v1605_v23 = vadd.f32 %v1596_v44, %v1593_v4  ;;  %v1857_v44 = vadd.f32 %v2196_v31, %v2059_v42 }
 0xc14   : > { %v2052_v46 = vmul.f32 -1.442695, %v1598_v45  ;;  %v1878_v45 = vlaneseq }
 0xc16   : > { %2411 = vpow2.f32 %v2052_v46  ;;  %v1852_v46 = vadd.f32 %v2059_v42, %v1851_v32 }
 0xc20   : > { %v2412_v50 = vpop.eup %2411 }
 0xc21   : > { %v1602_v54 = vadd.f32 1.0, %v2412_v50  ;;  %v1871_v50 = vmax.f32 %v1857_v44, 0.0 }
 0xc23   : > { %2413 = vrcp.f32 %v1602_v54  ;;  %v1879_v54 = vand.u32 127, %v1878_v45 }
 0xc25   : > { %vm1880_vm4 = vcmp.eq.s32.totalorder %v1879_v54, 48 }
 0xc2d   : > { %v2414_v55 = vpop.eup %2413 }
 0xc2e   : > { %v1617_v56 = vmul.f32 %v2414_v55, %v1615_v48  ;;  %v1870_v55 = vmax.f32 %v1852_v46, 0.0 }
 0xc30   : > { %1619 = vrot.lane.b32.xlu0 %v1617_v56, %s2561_s24 }
 0xc34   : > { %979 = vrot.lane.b32.xlu0 %v2933_v60, %s2562_s30  ;;  %v2053_v60 = vmul.f32 -1.442695, %v1605_v23 }
 0xc38   : > { %1434 = vrot.lane.b32.xlu0 %v2992_v30, %s2562_s30 }
 0xca2   : > { %v1620_v49 = vpop.permute.xlu0 %1619 }
 0xca3   : > { %v1622_v52 = vadd.f32 %v1620_v49, %v1593_v4 }
 0xca5   : > { %2415 = vtanh.f32 %v1622_v52 }
 0xca6   : > { %v980_v57 = vpop.permute.xlu0 %979  ;;  %2417 = vpow2.f32 %v2053_v60 }
 0xca7   : > { %v982_v10 = vadd.f32 %v980_v57, %v2891_v59 }
 0xca9   : > { %984 = vrot.lane.b32.xlu0 %v982_v10, %s2563_s21 }
 0xcaa   : > { %v1435_v8 = vpop.permute.xlu0 %1434 }
 0xcab   : > { %v1437_v18 = vadd.f32 %v1435_v8, %v2961_v43  ;;  %v1650_v43 = vld [vmem:[%s3142_s9] sm:$0xff] }
 0xcac   : > { %v2272_v62 = vpack.c.bf16 %v1651_v53, %v1650_v43 }
 0xcad   : > { %1439 = vrot.lane.b32.xlu0 %v1437_v18, %s2563_s21 }
 0xcae   : > { %2273 = vmatprep.subr.bf16.mxu0 %v2272_v62 }
 0xcaf   : > { %v2416_v58 = vpop.eup %2415  ;;  %2275 = vmatpush3.bf16.msra.mxu0 %v2272_v62 }
 0xcb0   : > { %1626 = vrot.lane.b32.xlu1 %v2416_v58, %s2563_s21  ;;  %v2418_v20 = vpop.eup %2417 }
 0xcb1   : > { %v1609_v61 = vadd.f32 1.0, %v2418_v20 }
 0xcb3   : > { %2419 = vrcp.f32 %v1609_v61 }
 0xcb4   : > { %1206 = vrot.lane.b32.xlu1 %v2966_v51, %s2562_s30  ;;  %v1652_v51 = vld [vmem:[%s3142_s9 + $0x10] sm:$0xff] }
 0xcb5   : > { %v2276_v24 = vpack.c.bf16 %v1653_v0, %v1652_v51 }
 0xcb7   : > { %2277 = vmatprep.subr.bf16.mxu0 %v2276_v24 }
 0xcb8   : > { %2279 = vmatpush3.bf16.msra.mxu0 %v2276_v24 }
 0xcbd   : > { %v2420_v63 = vpop.eup %2419 }
 0xcbe   : > { %v1624_v2 = vsub.f32 1.0, %v2420_v63  ;;  %v1630_v5 = vmul.f32 %v2420_v63, %v2992_v30 }
 0xd1b   : > { %v985_v59 = vpop.permute.xlu0 %984 }
 0xd1c   : > { %987 = vst.msk [vmem:[#allocation3] sm:$0xff] %vm512_vm1, %v985_v59 }
 0xd1f   : > { %v1440_v1 = vpop.permute.xlu0 %1439 }
 0xd20   : > { %1443 = vst.msk [vmem:[#allocation3 + $0x10] sm:$0xff] %vm512_vm1, %v1440_v1 }
 0xd22   : > { %v1627_v3 = vpop.permute.xlu1 %1626 }
 0xd23   : > { %v1629_v6 = vmul.f32 %v1627_v3, %v1624_v2  ;;  %v1646_v7 = vld [vmem:[#allocation3] sm:$0xff] }
 0xd24   : > { %2180 = vmatprep.mubr.msk.f32.mxu0 %vm512_vm1, %v1646_v7 }
 0xd25   : > { %v1631_v9 = vadd.f32 %v1630_v5, %v1629_v6 }
 0xd26   : > { %v1207_v13 = vpop.permute.xlu1 %1206 }
 0xd27   : > { %1645 = vst.msk [vmem:[#allocation5] sm:$0xff] %vm512_vm1, %v1631_v9  ;;  %1633 = vrot.lane.b32.xlu1 %v1631_v9, %s2562_s30  ;;  %v1209_v21 = vadd.f32 %v1207_v13, %v2928_v47  ;;  %v1648_v30 = vld [vmem:[#allocation3 + $0x10] sm:$0xff] }
 0xd2b   : > { %1211 = vrot.lane.b32.xlu1 %v1209_v21, %s2563_s21 }
 0xd99   : > { %v1634_v27 = vpop.permute.xlu1 %1633 }
 0xd9a   : > { %v1636_v28 = vadd.f32 %v1634_v27, %v2997_v35  ;;  %v2199_v35 = vpop.f32.mrb[12].mxu1 }
 0xd9b   : > { %v1861_v36 = vpop.f32.mrb[13].mxu1  ;;  %v1867_v59 = vadd.f32 %v2199_v35, %v2059_v42 }
 0xd9c   : > { %1638 = vrot.lane.b32.xlu1 %v1636_v28, %s2563_s21  ;;  %v1862_v43 = vadd.f32 %v2059_v42, %v1861_v36 }
 0xd9d   : > { %v1212_v47 = vpop.permute.xlu1 %1211  ;;  %v1873_v53 = vmax.f32 %v1867_v59, 0.0 }
 0xd9e   : > { %1215 = vst.msk [vmem:[#allocation3 + $0x8] sm:$0xff] %vm512_vm1, %v1212_v47  ;;  %v1872_v62 = vmax.f32 %v1862_v43, 0.0 }
 0xda5   : > { %v1647_v29 = vld [vmem:[#allocation3 + $0x8] sm:$0xff] }
 0xda6   : > { %2181 = vmatmul.mubr.msk.f32.vlgmr.msra.gmra.mrb[12].mxu0 %vm512_vm1, %v1647_v29 }
 0xda7   : > { %2183 = vmatprep.mubr.msk.f32.mxu0 %vm512_vm1, %v1648_v30 }
 0xe0e   : > { %v1639_v33 = vpop.permute.xlu1 %1638 }
 0xe0f   : > { %1642 = vst.msk [vmem:[#allocation3 + $0x18] sm:$0xff] %vm512_vm1, %v1639_v33 }
 0xe16   : > { %v1649_v34 = vld [vmem:[#allocation3 + $0x18] sm:$0xff] }
 0xe17   : > { %2184 = vmatmul.mubr.msk.f32.gmra.mrb[14].mxu0 %vm512_vm1, %v1649_v34 }
 0xe79   : > { %v2182_v38 = vpop.f32.mrb[12].mxu0 }
 0xe7a   : > { %v1745_v39 = vadd.f32 %v2182_v38, %v2054_v37  ;;  %v1739_v40 = vpop.f32.mrb[13].mxu0 }
 0xe7b   : > { %v1740_v41 = vadd.f32 %v2054_v37, %v1739_v40 }
 0xe7c   : > { %2421 = vtanh.f32 %v1745_v39 }
 0xe7d   : > { %2423 = vtanh.f32 %v1740_v41 }
 0xe86   : > { %v2422_v48 = vpop.eup %2421 }
 0xe87   : > { %v2424_v56 = vpop.eup %2423  ;;  %v1882_v4 = vmul.f32 0.5, %v2422_v48  ;;  %v1890_v49 = vadd.f32 %v2422_v48, %v1871_v50 }
 0xe88   : > { %v1881_v52 = vmul.f32 0.5, %v2424_v56  ;;  %v1889_v57 = vadd.f32 %v2424_v56, %v1870_v55 }
 0xe89   : > { %v1886_v10 = vadd.f32 0.5, %v1882_v4 }
 0xe8a   : > { %v1885_v8 = vadd.f32 0.5, %v1881_v52 }
 0xe8b   : > { %v1894_v18 = vsel %vm1880_vm4, %v1886_v10, %v1890_v49 }
 0xe8c   : > { %1898 = vst [vmem:[%s2775_s25 + $0x8] sm:$0xff] %v1894_v18  ;;  %v1893_v58 = vsel %vm1880_vm4, %v1885_v8, %v1889_v57 }
 0xe8d   : > { %1897 = vst [vmem:[%s2775_s25] sm:$0xff] %v1893_v58 }
 0xeea   : > { %v2185_v23 = vpop.f32.mrb[14].mxu0 }
 0xeeb   : > { %v1755_v60 = vadd.f32 %v2185_v23, %v2054_v37  ;;  %v1749_v20 = vpop.f32.mrb[15].mxu0 }
 0xeec   : > { %v1750_v61 = vadd.f32 %v2054_v37, %v1749_v20 }
 0xeed   : > { %2425 = vtanh.f32 %v1755_v60 }
 0xeee   : > { %2427 = vtanh.f32 %v1750_v61 }
 0xef7   : > { %v2426_v63 = vpop.eup %2425 }
 0xef8   : > { %v2428_v51 = vpop.eup %2427  ;;  %v1884_v0 = vmul.f32 0.5, %v2426_v63  ;;  %v1892_v1 = vadd.f32 %v2426_v63, %v1873_v53 }
 0xef9   : > { %v1883_v24 = vmul.f32 0.5, %v2428_v51  ;;  %v1891_v2 = vadd.f32 %v2428_v51, %v1872_v62 }
 0xefa   : > { %v1888_v3 = vadd.f32 0.5, %v1884_v0 }
 0xefb   : > { %v1887_v5 = vadd.f32 0.5, %v1883_v24 }
 0xefc   : > { %v1896_v6 = vsel %vm1880_vm4, %v1888_v3, %v1892_v1 }
 0xefd   : > { %1900 = vst [vmem:[%s2775_s25 + $0x18] sm:$0xff] %v1896_v6  ;;  %v1895_v7 = vsel %vm1880_vm4, %v1887_v5, %v1891_v2 }
 0xefe   : > { %1899 = vst [vmem:[%s2775_s25 + $0x10] sm:$0xff] %v1895_v7 }
 0xeff   : > { %2498 = shalt.err (!%p2495_p0)
}
 0xf00   : > { %s2499_s25 = scalar_lea.hbm %s3082_s20, 512  ;;  %s2503_s14 = scalar_lea.hbm %s3146_s13, 1024 }
 0xf01   : > { %p2500_p1 = scmp.ne.s32.totalorder %s3082_s20, %s2499_s25  ;;  %p2504_p9 = scmp.lt.u32.totalorder %s3082_s20, %s3146_s13 }
 0xf02   : > { %p2505_p13 = scmp.lt.u32.totalorder %s2503_s14, %s2499_s25  ;;  %p2507_p11 = scmp.lt.u32.totalorder %s2499_s25, %s3082_s20 }
 0xf03   : > { %p2501_p6 = pnand %p2500_p1, %p3174_p2 }
 0xf04   : > { %p2506_p10 = por %p2505_p13, %p2504_p9 }
 0xf05   : > { %p2502_p5 = pneg %p2501_p6 }
 0xf06   : > { %p2508_p3 = por %p2507_p11, %p2506_p10 }
 0xf08   : > { %p2509_p4 = pnand %p2508_p3, %p2502_p5 }
 0xf0a   : > { %2512 = shalt.err (!%p2509_p4)
}
 0xf0b   : > { %s2567_s24 = smov 128   ;;  %s2568_s29 = smov 8  }
 0xf0c   : > { %2296 = dma.vmem_to_hbm [thread:$0]  (%p3174_p2), %s3084_s17, 512, %s3082_s20, %s3092_s19, %s2567_s24, %s2567_s24, %s2568_s29  }
 0xf0d PF: > { %s3175_s27 = sld [smem:[#allocation15_spill]]  ;;  %s3176_s23 = sld [smem:[#allocation19_spill]] }
 0xf0e   : > { %p2313_p7 = scmp.ge.s32.totalorder %s2555_s28, 2 }
 0xf13   : > { %s1930_s15 = sand.u32 1, %s3175_s27   ;;  %p3177_p8 = scmp.ne.s32.totalorder %s3176_s23, 0 }
 0xf14   : > { %s1931_s22 = scalar_lea.sflag [#allocation8], %s1930_s15 }
 0xf15   : > { %p2306_p12 = pnand %p2313_p7, %p3177_p8 }
 0xf17   : > { %2538 = dma.done.wait (!%p2306_p12), %s1931_s22, 512  }
 0xf18   : > { %2540 = vsyncadd (!%p2306_p12), %s1931_s22, 4294966784  ;;  %s3178_s28 = sld [smem:[#allocation17_spill]]  ;;  %s3179_s30 = sld [smem:[#allocation16_spill]] }
 0xf19   : > { %s3180_s27 = sld [smem:[#allocation18_spill]]  ;;  %s3181_s25 = smov %s2547_s26 }
 0xf1e   : > { %p25_p0 = scmp.ge.s32.totalorder %s3178_s28, 4   ;;  %s3182_s26 = smov %s3179_s30 }
 0xf20   :  { %27 = sbr.rel (!%p25_p0) target bundleno = 7 (0x7), region = 129 }
 0xf27   :  { %1936 = vsyncpa [#allocation7], 1 }
 0xf28   :  { %1938 = vsyncpa [#allocation7 + $0x1], 1 }
 0xf29   :  { %1939 = vsyncpa [#allocation10], 1 }
 0xf2a   :  { %1940 = vsyncpa [#allocation8], 1 }
 0xf2b   :  { %1942 = vsyncpa [#allocation8 + $0x1], 1 }

</bundles_post_ra>
